<compile_context>
chip_gen: v5e
topology: v5e:2x2
jax: 0.10.0
libtpu: 0.0.40
codegen_flags: <defaults>
</compile_context>

<pallas_src>
import jax
import jax.numpy as jnp
from jax.experimental import pallas as pl
from jax.experimental.pallas import tpu as pltpu


# ----------------------------- config -------------------------------------
IMAGE_SIZE = 16
PATCH_SIZE = 8
NUM_CLASSES = 10
DIM = 32
DEPTH = 2
HEADS = 4
DIM_HEAD = 8
MLP_DIM = 64
CHANNELS = 3
POOL = "cls"

NUM_PATCHES = (IMAGE_SIZE // PATCH_SIZE) ** 2          # 4
PATCH_DIM = CHANNELS * PATCH_SIZE * PATCH_SIZE         # 192
SEQ = NUM_PATCHES + 1                                  # 5 (cls + patches)
INNER = HEADS * DIM_HEAD                               # 32
LN_EPS = 1e-5
NEG_INF = -1e30
VEC_LANES = 128        # packed-vector slab width (>= max(DIM, MLP_DIM, NUM_CLASSES))
QKV_W = 2 * DIM_HEAD + DIM                             # fused per-head [q|k|v@Wo] width


# --------------------------- in-kernel math --------------------------------
def _layernorm(x, g, b, eps=LN_EPS):
    # PyTorch nn.LayerNorm semantics: biased variance, eps inside sqrt.
    mu = jnp.mean(x, axis=-1, keepdims=True)
    var = jnp.mean((x - mu) ** 2, axis=-1, keepdims=True)
    return (x - mu) * jax.lax.rsqrt(var + eps) * g + b


def _erf(x):
    # Abramowitz & Stegun 7.1.26 rational approximation (~1.5e-7 max abs err).
    # Exact reciprocal here (review: approx recip error compounds through poly).
    a1, a2, a3, a4, a5 = 0.254829592, -0.284496736, 1.421413741, -1.453152027, 1.061405429
    p = 0.3275911
    s = jnp.where(x >= 0.0, 1.0, -1.0)
    ax = jnp.abs(x)
    t = 1.0 / (1.0 + p * ax)
    poly = ((((a5 * t + a4) * t + a3) * t + a2) * t + a1) * t
    return s * (1.0 - poly * jnp.exp(-ax * ax))


def _gelu_exact(x):
    return 0.5 * x * (1.0 + _erf(x * 0.7071067811865475))


# ----------------------------- fused kernel --------------------------------
def vit_fused_kernel(x_ref, add_ref, mask_ref, tile_ref, rep_ref, bd_ref,
                     sum_ref, pool_ref, patch_w_ref,
                     wstk_ref, w1_ref, w2_ref, vecs_ref,
                     head_w_ref, head_vecs_ref, o_ref):
    bf16 = jnp.bfloat16

    # ---- patch embedding; cls-token / pos-emb / patch-bias pre-folded into add_ref ----
    x = jnp.dot(x_ref[...], patch_w_ref[...],
                preferred_element_type=jnp.float32) + add_ref[...]        # (BS, DIM) f32

    attn_mask = mask_ref[...]       # (H*BS, H*BS) f32 additive head+batch mask
    tile_m = tile_ref[...]          # (DIM, H*DIM)  bf16  [I I I I]
    rep_m = rep_ref[...]            # (H*BS, BS)    bf16  sublane replication
    bd_m = bd_ref[...]              # (H*BS, H*DIM) f32   block-diag 0/1 mask
    sum_m = sum_ref[...]            # (BS, H*BS)    bf16  head-sum matrix

    for l in range(DEPTH):                                                # static unroll
        vec = vecs_ref[l]                                                 # (8, 128) f32
        ln1_g = vec[0:1, :DIM]
        ln1_b = vec[1:2, :DIM]
        bo    = vec[2:3, :DIM]
        ln2_g = vec[3:4, :DIM]
        ln2_b = vec[4:5, :DIM]
        b2    = vec[5:6, :DIM]
        b1    = vec[6:7, :MLP_DIM]

        # ---- PreNorm(Attention) + residual: all heads in ONE stacked computation ----
        xn = _layernorm(x, ln1_g, ln1_b).astype(bf16)                     # (BS, DIM)
        # lane-tile then sublane-replicate then block-diag mask -> per-head weights
        # via a single fused stacked dot (no per-head loop, no lane concat).
        xt = jnp.dot(xn, tile_m, preferred_element_type=jnp.float32)      # (BS, H*DIM)
        xbd = (jnp.dot(rep_m, xt.astype(bf16),
                       preferred_element_type=jnp.float32) * bd_m).astype(bf16)  # (H*BS, H*DIM)
        qkv = jnp.dot(xbd, wstk_ref[l],
                      preferred_element_type=jnp.float32)                 # (H*BS, 2*dh + DIM)
        q = qkv[:, :DIM_HEAD].astype(bf16)                # scale folded in at pack time
        k = qkv[:, DIM_HEAD:2 * DIM_HEAD].astype(bf16)
        v = qkv[:, 2 * DIM_HEAD:].astype(bf16)            # V @ Wo folded in at pack time

        s = jax.lax.dot_general(q, k, (((1,), (1,)), ((), ())),
                                preferred_element_type=jnp.float32) + attn_mask   # (H*BS, H*BS)
        s = s - jnp.max(s, axis=-1, keepdims=True)
        e = jnp.exp(s)
        p = e * pl.reciprocal(jnp.sum(e, axis=-1, keepdims=True), approx=True)
        ov = jnp.dot(p.astype(bf16), v, preferred_element_type=jnp.float32)       # (H*BS, DIM)
        attn_out = jnp.dot(sum_m, ov.astype(bf16),
                           preferred_element_type=jnp.float32)                    # (BS, DIM)
        x = x + attn_out + bo

        # ---- PreNorm(FeedForward) + residual ----
        xn2 = _layernorm(x, ln2_g, ln2_b).astype(bf16)
        hdn = _gelu_exact(jnp.dot(xn2, w1_ref[l],
                                  preferred_element_type=jnp.float32) + b1)
        x = x + jnp.dot(hdn.astype(bf16), w2_ref[l],
                        preferred_element_type=jnp.float32) + b2

    # ---- pooling (selection-matrix matmul) + LayerNorm + Linear head ----
    pooled = jnp.dot(pool_ref[...], x.astype(bf16),
                     preferred_element_type=jnp.float32)                  # (B, DIM)
    hv = head_vecs_ref[...]
    pn = _layernorm(pooled, hv[0:1, :DIM], hv[1:2, :DIM]).astype(bf16)
    o_ref[...] = (jnp.dot(pn, head_w_ref[...], preferred_element_type=jnp.float32)
                  + hv[2:3, :NUM_CLASSES])


def vit_fused(x_in, packed):
    batch = x_in.shape[0] // SEQ
    args = (x_in, packed["add_slab"], packed["attn_mask"], packed["tile"],
            packed["rep"], packed["bd"], packed["summ"], packed["pool_sel"],
            packed["patch_w"], packed["wstk"], packed["w1"], packed["w2"],
            packed["vecs"], packed["head_w"], packed["head_vecs"])
    # No grid: single invocation, every (tiny) operand resident in VMEM,
    # no pipeline prologue / double-buffering overhead.
    return pl.pallas_call(
        vit_fused_kernel,
        out_shape=jax.ShapeDtypeStruct((batch, NUM_CLASSES), jnp.float32),
        in_specs=[pl.BlockSpec(memory_space=pltpu.MemorySpace.VMEM) for _ in args],
        out_specs=pl.BlockSpec(memory_space=pltpu.MemorySpace.VMEM),
    )(*args)


# ----------------------------- params & packing ----------------------------
def init_params(key):
    ks = iter(jax.random.split(key, 4 + DEPTH * 4))
    nrm = lambda shape, s=0.02: s * jax.random.normal(next(ks), shape, jnp.float32)

    params = {
        "patch_w": nrm((PATCH_DIM, DIM)),
        "patch_b": jnp.zeros((DIM,), jnp.float32),
        "pos_emb": jax.random.normal(next(ks), (SEQ, DIM), jnp.float32),
        "cls_token": jax.random.normal(next(ks), (DIM,), jnp.float32),
        "head_ln_g": jnp.ones((DIM,), jnp.float32),
        "head_ln_b": jnp.zeros((DIM,), jnp.float32),
        "head_w": nrm((DIM, NUM_CLASSES)),
        "head_b": jnp.zeros((NUM_CLASSES,), jnp.float32),
        "layers": [],
    }
    for _ in range(DEPTH):
        params["layers"].append({
            "ln1_g": jnp.ones((DIM,), jnp.float32),
            "ln1_b": jnp.zeros((DIM,), jnp.float32),
            "wqkv": nrm((DIM, 3 * INNER)),     # == torch to_qkv.weight.T (q|k|v cols)
            "wo": nrm((INNER, DIM)),
            "bo": jnp.zeros((DIM,), jnp.float32),
            "ln2_g": jnp.ones((DIM,), jnp.float32),
            "ln2_b": jnp.zeros((DIM,), jnp.float32),
            "w1": nrm((DIM, MLP_DIM)),
            "b1": jnp.zeros((MLP_DIM,), jnp.float32),
            "w2": nrm((MLP_DIM, DIM)),
            "b2": jnp.zeros((DIM,), jnp.float32),
        })
    return params


def pack_params(params, batch):
    """One-time layout prep: fold scale into Q and Wo into V, stack per-head
    weights sublane-major, cast MXU operands to bf16, and precompute every
    batch-static structural matrix (masks, replication, head-sum, pooling)."""
    scale = DIM_HEAD ** (-0.5)
    bs = batch * SEQ
    hbs = HEADS * bs
    bf = lambda a: a.astype(jnp.bfloat16)

    def pad_lanes(v):
        return jnp.pad(v, (0, VEC_LANES - v.shape[0]))

    wstk_all, w1_all, w2_all, vecs_all = [], [], [], []
    for lp in params["layers"]:
        wqkv, wo = lp["wqkv"], lp["wo"]
        blocks = []
        for h in range(HEADS):
            sl = slice(h * DIM_HEAD, (h + 1) * DIM_HEAD)
            wq = wqkv[:, sl] * scale                                  # scale folded into Q
            wk = wqkv[:, INNER + h * DIM_HEAD: INNER + (h + 1) * DIM_HEAD]
            wv = wqkv[:, 2 * INNER + h * DIM_HEAD: 2 * INNER + (h + 1) * DIM_HEAD]
            wvo = wv @ wo[sl, :]                                      # fold Wo into V
            blocks.append(jnp.concatenate([wq, wk, wvo], axis=1))     # (DIM, QKV_W)
        wstk_all.append(jnp.concatenate(blocks, axis=0))              # (HEADS*DIM, QKV_W)
        w1_all.append(lp["w1"])
        w2_all.append(lp["w2"])
        vecs_all.append(jnp.stack([
            pad_lanes(lp["ln1_g"]), pad_lanes(lp["ln1_b"]), pad_lanes(lp["bo"]),
            pad_lanes(lp["ln2_g"]), pad_lanes(lp["ln2_b"]), pad_lanes(lp["b2"]),
            pad_lanes(lp["b1"]), jnp.zeros((VEC_LANES,), jnp.float32),
        ], axis=0))

    head_vecs = jnp.stack(
        [pad_lanes(params["head_ln_g"]), pad_lanes(params["head_ln_b"]),
         pad_lanes(params["head_b"])]
        + [jnp.zeros((VEC_LANES,), jnp.float32)] * 5, axis=0)          # (8, 128)

    # additive slab per sequence position (cls+pos for row 0, patch_b+pos else),
    # tiled over the batch ONCE here (not per forward call).
    add_base = jnp.concatenate(
        [(params["cls_token"] + params["pos_emb"][0])[None, :],
         params["patch_b"][None, :] + params["pos_emb"][1:]], axis=0)  # (SEQ, DIM)
    add_slab = jnp.tile(add_base, (batch, 1))                          # (BS, DIM)

    # ---- batch-static structural matrices ----
    eye_bs = jnp.eye(bs, dtype=jnp.float32)
    tile_m = jnp.concatenate([jnp.eye(DIM, dtype=jnp.float32)] * HEADS, axis=1)  # (DIM, H*DIM)
    rep_m = jnp.concatenate([eye_bs] * HEADS, axis=0)                            # (H*BS, BS)
    sum_m = jnp.concatenate([eye_bs] * HEADS, axis=1)                            # (BS, H*BS)
    bd_m = (jnp.arange(hbs)[:, None] // bs ==
            jnp.arange(HEADS * DIM)[None, :] // DIM).astype(jnp.float32)         # (H*BS, H*DIM)

    r = jnp.arange(hbs)
    same_head = (r[:, None] // bs) == (r[None, :] // bs)
    same_img = ((r[:, None] % bs) // SEQ) == ((r[None, :] % bs) // SEQ)
    attn_mask = jnp.where(same_head & same_img, 0.0, NEG_INF).astype(jnp.float32)

    if POOL == "cls":
        pool_sel = (jnp.arange(bs)[None, :] ==
                    (jnp.arange(batch) * SEQ)[:, None]).astype(jnp.float32)
    else:  # mean pooling
        pool_sel = ((jnp.arange(bs)[None, :] // SEQ) ==
                    jnp.arange(batch)[:, None]).astype(jnp.float32) / SEQ

    return {
        "patch_w": bf(params["patch_w"]),        # (PATCH_DIM, DIM)
        "wstk": bf(jnp.stack(wstk_all)),         # (DEPTH, HEADS*DIM, QKV_W)
        "w1": bf(jnp.stack(w1_all)),             # (DEPTH, DIM, MLP_DIM)
        "w2": bf(jnp.stack(w2_all)),             # (DEPTH, MLP_DIM, DIM)
        "vecs": jnp.stack(vecs_all),             # (DEPTH, 8, 128) f32
        "head_w": bf(params["head_w"]),          # (DIM, NUM_CLASSES)
        "head_vecs": head_vecs,                  # (8, 128) f32
        "add_slab": add_slab,                    # (BS, DIM) f32
        "attn_mask": attn_mask,                  # (H*BS, H*BS) f32
        "tile": bf(tile_m),
        "rep": bf(rep_m),
        "bd": bd_m,                              # f32 (elementwise mask)
        "summ": bf(sum_m),
        "pool_sel": bf(pool_sel),                # (B, BS)
    }


# ----------------------------- glue + forward -------------------------------
def to_patches(img, p):
    # 'b c (h p1) (w p2) -> b (h w) (p1 p2 c)'   (pure layout, plain JAX)
    B, C, H, W = img.shape
    h, w = H // p, W // p
    x = img.reshape(B, C, h, p, w, p)
    x = x.transpose(0, 2, 4, 3, 5, 1)          # b h w p1 p2 c
    return x.reshape(B, h * w, p * p * C)


@jax.jit
def vit_forward(img, packed):
    B = img.shape[0]
    patches = to_patches(img, PATCH_SIZE)                         # (B, N, PATCH_DIM)
    # row 0 of each per-image sequence is the cls slot: zero patch input
    # (its value comes entirely from the additive slab).
    x_in = jnp.concatenate(
        [jnp.zeros((B, 1, PATCH_DIM), jnp.float32), patches], axis=1
    ).reshape(B * SEQ, PATCH_DIM).astype(jnp.bfloat16)            # (B*SEQ, PATCH_DIM)
    return vit_fused(x_in, packed)                                # [single Pallas call]


if __name__ == "__main__":
    key = jax.random.PRNGKey(0)
    k_img, k_params = jax.random.split(key)
    img = jax.random.normal(k_img, (2, CHANNELS, IMAGE_SIZE, IMAGE_SIZE), jnp.float32)
    params = init_params(k_params)
    packed = pack_params(params, batch=2)     # one-time parameter / structure prep

    logits = vit_forward(img, packed)
    jax.block_until_ready(logits)
    assert logits.shape == (2, NUM_CLASSES)
    print("KERNEL_OK")
</pallas_src>

<mosaic_0001>
module attributes {stable_mosaic.version = 11 : i64} {
  func.func @vit_fused_kernel(%arg0: memref<10x192xbf16, #tpu.memory_space<vmem>>, %arg1: memref<10x32xf32, #tpu.memory_space<vmem>>, %arg2: memref<40x40xf32, #tpu.memory_space<vmem>>, %arg3: memref<32x128xbf16, #tpu.memory_space<vmem>>, %arg4: memref<40x10xbf16, #tpu.memory_space<vmem>>, %arg5: memref<40x128xf32, #tpu.memory_space<vmem>>, %arg6: memref<10x40xbf16, #tpu.memory_space<vmem>>, %arg7: memref<2x10xbf16, #tpu.memory_space<vmem>>, %arg8: memref<192x32xbf16, #tpu.memory_space<vmem>>, %arg9: memref<2x128x48xbf16, #tpu.memory_space<vmem>>, %arg10: memref<2x32x64xbf16, #tpu.memory_space<vmem>>, %arg11: memref<2x64x32xbf16, #tpu.memory_space<vmem>>, %arg12: memref<2x8x128xf32, #tpu.memory_space<vmem>>, %arg13: memref<32x10xbf16, #tpu.memory_space<vmem>>, %arg14: memref<8x128xf32, #tpu.memory_space<vmem>>, %arg15: memref<2x10xf32, #tpu.memory_space<vmem>>) attributes {dimension_semantics = [], scalar_prefetch = 0 : i64, scratch_operands = 0 : i64, tpu.core_type = #tpu.core_type<tc>} {
    %c0 = arith.constant 0 : index
    %c0_0 = arith.constant 0 : index
    %0 = vector.load %arg0[%c0, %c0_0] : memref<10x192xbf16, #tpu.memory_space<vmem>>, vector<10x192xbf16>
    %c0_1 = arith.constant 0 : index
    %c0_2 = arith.constant 0 : index
    %1 = vector.load %arg8[%c0_1, %c0_2] : memref<192x32xbf16, #tpu.memory_space<vmem>>, vector<192x32xbf16>
    %cst = arith.constant dense<0.000000e+00> : vector<10x32xf32>
    %2 = tpu.matmul %0, %1, %cst {dimension_numbers = #tpu.dot_dimension_numbers<[1], [0], [0], [1], [0, 0, 1, 1], [], []>} : vector<10x192xbf16>, vector<192x32xbf16>, vector<10x32xf32> -> vector<10x32xf32>
    %c0_3 = arith.constant 0 : index
    %c0_4 = arith.constant 0 : index
    %3 = vector.load %arg1[%c0_3, %c0_4] : memref<10x32xf32, #tpu.memory_space<vmem>>, vector<10x32xf32>
    %4 = arith.addf %2, %3 : vector<10x32xf32>
    %c0_5 = arith.constant 0 : index
    %c0_6 = arith.constant 0 : index
    %5 = vector.load %arg2[%c0_5, %c0_6] : memref<40x40xf32, #tpu.memory_space<vmem>>, vector<40x40xf32>
    %c0_7 = arith.constant 0 : index
    %c0_8 = arith.constant 0 : index
    %6 = vector.load %arg3[%c0_7, %c0_8] : memref<32x128xbf16, #tpu.memory_space<vmem>>, vector<32x128xbf16>
    %c0_9 = arith.constant 0 : index
    %c0_10 = arith.constant 0 : index
    %7 = vector.load %arg4[%c0_9, %c0_10] : memref<40x10xbf16, #tpu.memory_space<vmem>>, vector<40x10xbf16>
    %c0_11 = arith.constant 0 : index
    %c0_12 = arith.constant 0 : index
    %8 = vector.load %arg5[%c0_11, %c0_12] : memref<40x128xf32, #tpu.memory_space<vmem>>, vector<40x128xf32>
    %c0_13 = arith.constant 0 : index
    %c0_14 = arith.constant 0 : index
    %9 = vector.load %arg6[%c0_13, %c0_14] : memref<10x40xbf16, #tpu.memory_space<vmem>>, vector<10x40xbf16>
    %c0_15 = arith.constant 0 : index
    %c0_16 = arith.constant 0 : index
    %c0_17 = arith.constant 0 : index
    %10 = vector.load %arg12[%c0_15, %c0_16, %c0_17] : memref<2x8x128xf32, #tpu.memory_space<vmem>>, vector<1x8x128xf32>
    %11 = vector.shape_cast %10 : vector<1x8x128xf32> to vector<8x128xf32>
    %12 = vector.extract_strided_slice %11 {offsets = [0, 0], sizes = [1, 32], strides = [1, 1]} : vector<8x128xf32> to vector<1x32xf32>
    %13 = vector.extract_strided_slice %11 {offsets = [1, 0], sizes = [1, 32], strides = [1, 1]} : vector<8x128xf32> to vector<1x32xf32>
    %14 = vector.extract_strided_slice %11 {offsets = [2, 0], sizes = [1, 32], strides = [1, 1]} : vector<8x128xf32> to vector<1x32xf32>
    %15 = vector.extract_strided_slice %11 {offsets = [3, 0], sizes = [1, 32], strides = [1, 1]} : vector<8x128xf32> to vector<1x32xf32>
    %16 = vector.extract_strided_slice %11 {offsets = [4, 0], sizes = [1, 32], strides = [1, 1]} : vector<8x128xf32> to vector<1x32xf32>
    %17 = vector.extract_strided_slice %11 {offsets = [5, 0], sizes = [1, 32], strides = [1, 1]} : vector<8x128xf32> to vector<1x32xf32>
    %18 = vector.extract_strided_slice %11 {offsets = [6, 0], sizes = [1, 64], strides = [1, 1]} : vector<8x128xf32> to vector<1x64xf32>
    %cst_18 = arith.constant dense<0.000000e+00> : vector<10xf32>
    %19 = vector.multi_reduction <add>, %4, %cst_18 [1] : vector<10x32xf32> to vector<10xf32>
    %20 = vector.shape_cast %19 : vector<10xf32> to vector<10x1xf32>
    %cst_19 = arith.constant 3.200000e+01 : f32
    %21 = vector.broadcast %cst_19 : f32 to vector<10x1xf32>
    %22 = arith.divf %20, %21 : vector<10x1xf32>
    %23 = vector.broadcast %22 : vector<10x1xf32> to vector<10x32xf32>
    %24 = arith.subf %4, %23 : vector<10x32xf32>
    %25 = arith.mulf %24, %24 : vector<10x32xf32>
    %cst_20 = arith.constant dense<0.000000e+00> : vector<10xf32>
    %26 = vector.multi_reduction <add>, %25, %cst_20 [1] : vector<10x32xf32> to vector<10xf32>
    %27 = vector.shape_cast %26 : vector<10xf32> to vector<10x1xf32>
    %cst_21 = arith.constant 3.200000e+01 : f32
    %28 = vector.broadcast %cst_21 : f32 to vector<10x1xf32>
    %29 = arith.divf %27, %28 : vector<10x1xf32>
    %30 = vector.broadcast %22 : vector<10x1xf32> to vector<10x32xf32>
    %31 = arith.subf %4, %30 : vector<10x32xf32>
    %cst_22 = arith.constant 9.99999974E-6 : f32
    %32 = vector.broadcast %cst_22 : f32 to vector<10x1xf32>
    %33 = arith.addf %29, %32 : vector<10x1xf32>
    %34 = math.rsqrt %33 : vector<10x1xf32>
    %35 = vector.broadcast %34 : vector<10x1xf32> to vector<10x32xf32>
    %36 = arith.mulf %31, %35 : vector<10x32xf32>
    %37 = vector.broadcast %12 : vector<1x32xf32> to vector<10x32xf32>
    %38 = arith.mulf %36, %37 : vector<10x32xf32>
    %39 = vector.broadcast %13 : vector<1x32xf32> to vector<10x32xf32>
    %40 = arith.addf %38, %39 : vector<10x32xf32>
    %41 = arith.truncf %40 : vector<10x32xf32> to vector<10x32xbf16>
    %cst_23 = arith.constant dense<0.000000e+00> : vector<10x128xf32>
    %42 = tpu.matmul %41, %6, %cst_23 {dimension_numbers = #tpu.dot_dimension_numbers<[1], [0], [0], [1], [0, 0, 1, 1], [], []>} : vector<10x32xbf16>, vector<32x128xbf16>, vector<10x128xf32> -> vector<10x128xf32>
    %43 = arith.truncf %42 : vector<10x128xf32> to vector<10x128xbf16>
    %cst_24 = arith.constant dense<0.000000e+00> : vector<40x128xf32>
    %44 = tpu.matmul %7, %43, %cst_24 {dimension_numbers = #tpu.dot_dimension_numbers<[1], [0], [0], [1], [0, 0, 1, 1], [], []>} : vector<40x10xbf16>, vector<10x128xbf16>, vector<40x128xf32> -> vector<40x128xf32>
    %45 = arith.mulf %44, %8 : vector<40x128xf32>
    %46 = arith.truncf %45 : vector<40x128xf32> to vector<40x128xbf16>
    %c0_25 = arith.constant 0 : index
    %c0_26 = arith.constant 0 : index
    %c0_27 = arith.constant 0 : index
    %47 = vector.load %arg9[%c0_25, %c0_26, %c0_27] : memref<2x128x48xbf16, #tpu.memory_space<vmem>>, vector<1x128x48xbf16>
    %48 = vector.shape_cast %47 : vector<1x128x48xbf16> to vector<128x48xbf16>
    %cst_28 = arith.constant dense<0.000000e+00> : vector<40x48xf32>
    %49 = tpu.matmul %46, %48, %cst_28 {dimension_numbers = #tpu.dot_dimension_numbers<[1], [0], [0], [1], [0, 0, 1, 1], [], []>} : vector<40x128xbf16>, vector<128x48xbf16>, vector<40x48xf32> -> vector<40x48xf32>
    %50 = vector.extract_strided_slice %49 {offsets = [0, 0], sizes = [40, 8], strides = [1, 1]} : vector<40x48xf32> to vector<40x8xf32>
    %51 = arith.truncf %50 : vector<40x8xf32> to vector<40x8xbf16>
    %52 = vector.extract_strided_slice %49 {offsets = [0, 8], sizes = [40, 8], strides = [1, 1]} : vector<40x48xf32> to vector<40x8xf32>
    %53 = arith.truncf %52 : vector<40x8xf32> to vector<40x8xbf16>
    %54 = vector.extract_strided_slice %49 {offsets = [0, 16], sizes = [40, 32], strides = [1, 1]} : vector<40x48xf32> to vector<40x32xf32>
    %55 = arith.truncf %54 : vector<40x32xf32> to vector<40x32xbf16>
    %cst_29 = arith.constant dense<0.000000e+00> : vector<40x40xf32>
    %56 = tpu.matmul %51, %53, %cst_29 {dimension_numbers = #tpu.dot_dimension_numbers<[1], [1], [0], [0], [0, 0, 1, 0], [], []>} : vector<40x8xbf16>, vector<40x8xbf16>, vector<40x40xf32> -> vector<40x40xf32>
    %57 = arith.addf %56, %5 : vector<40x40xf32>
    %cst_30 = arith.constant dense<0xFF800000> : vector<40xf32>
    %58 = vector.multi_reduction <maximumf>, %57, %cst_30 [1] : vector<40x40xf32> to vector<40xf32>
    %59 = vector.shape_cast %58 : vector<40xf32> to vector<40x1xf32>
    %60 = vector.broadcast %59 : vector<40x1xf32> to vector<40x40xf32>
    %61 = arith.subf %57, %60 : vector<40x40xf32>
    %62 = math.exp %61 : vector<40x40xf32>
    %cst_31 = arith.constant dense<0.000000e+00> : vector<40xf32>
    %63 = vector.multi_reduction <add>, %62, %cst_31 [1] : vector<40x40xf32> to vector<40xf32>
    %64 = vector.shape_cast %63 : vector<40xf32> to vector<40x1xf32>
    %65 = tpu.reciprocal %64 {approx = true} : vector<40x1xf32> -> vector<40x1xf32>
    %66 = vector.broadcast %65 : vector<40x1xf32> to vector<40x40xf32>
    %67 = arith.mulf %62, %66 : vector<40x40xf32>
    %68 = arith.truncf %67 : vector<40x40xf32> to vector<40x40xbf16>
    %cst_32 = arith.constant dense<0.000000e+00> : vector<40x32xf32>
    %69 = tpu.matmul %68, %55, %cst_32 {dimension_numbers = #tpu.dot_dimension_numbers<[1], [0], [0], [1], [0, 0, 1, 1], [], []>} : vector<40x40xbf16>, vector<40x32xbf16>, vector<40x32xf32> -> vector<40x32xf32>
    %70 = arith.truncf %69 : vector<40x32xf32> to vector<40x32xbf16>
    %cst_33 = arith.constant dense<0.000000e+00> : vector<10x32xf32>
    %71 = tpu.matmul %9, %70, %cst_33 {dimension_numbers = #tpu.dot_dimension_numbers<[1], [0], [0], [1], [0, 0, 1, 1], [], []>} : vector<10x40xbf16>, vector<40x32xbf16>, vector<10x32xf32> -> vector<10x32xf32>
    %72 = arith.addf %4, %71 : vector<10x32xf32>
    %73 = vector.broadcast %14 : vector<1x32xf32> to vector<10x32xf32>
    %74 = arith.addf %72, %73 : vector<10x32xf32>
    %cst_34 = arith.constant dense<0.000000e+00> : vector<10xf32>
    %75 = vector.multi_reduction <add>, %74, %cst_34 [1] : vector<10x32xf32> to vector<10xf32>
    %76 = vector.shape_cast %75 : vector<10xf32> to vector<10x1xf32>
    %cst_35 = arith.constant 3.200000e+01 : f32
    %77 = vector.broadcast %cst_35 : f32 to vector<10x1xf32>
    %78 = arith.divf %76, %77 : vector<10x1xf32>
    %79 = vector.broadcast %78 : vector<10x1xf32> to vector<10x32xf32>
    %80 = arith.subf %74, %79 : vector<10x32xf32>
    %81 = arith.mulf %80, %80 : vector<10x32xf32>
    %cst_36 = arith.constant dense<0.000000e+00> : vector<10xf32>
    %82 = vector.multi_reduction <add>, %81, %cst_36 [1] : vector<10x32xf32> to vector<10xf32>
    %83 = vector.shape_cast %82 : vector<10xf32> to vector<10x1xf32>
    %cst_37 = arith.constant 3.200000e+01 : f32
    %84 = vector.broadcast %cst_37 : f32 to vector<10x1xf32>
    %85 = arith.divf %83, %84 : vector<10x1xf32>
    %86 = vector.broadcast %78 : vector<10x1xf32> to vector<10x32xf32>
    %87 = arith.subf %74, %86 : vector<10x32xf32>
    %cst_38 = arith.constant 9.99999974E-6 : f32
    %88 = vector.broadcast %cst_38 : f32 to vector<10x1xf32>
    %89 = arith.addf %85, %88 : vector<10x1xf32>
    %90 = math.rsqrt %89 : vector<10x1xf32>
    %91 = vector.broadcast %90 : vector<10x1xf32> to vector<10x32xf32>
    %92 = arith.mulf %87, %91 : vector<10x32xf32>
    %93 = vector.broadcast %15 : vector<1x32xf32> to vector<10x32xf32>
    %94 = arith.mulf %92, %93 : vector<10x32xf32>
    %95 = vector.broadcast %16 : vector<1x32xf32> to vector<10x32xf32>
    %96 = arith.addf %94, %95 : vector<10x32xf32>
    %97 = arith.truncf %96 : vector<10x32xf32> to vector<10x32xbf16>
    %c0_39 = arith.constant 0 : index
    %c0_40 = arith.constant 0 : index
    %c0_41 = arith.constant 0 : index
    %98 = vector.load %arg10[%c0_39, %c0_40, %c0_41] : memref<2x32x64xbf16, #tpu.memory_space<vmem>>, vector<1x32x64xbf16>
    %99 = vector.shape_cast %98 : vector<1x32x64xbf16> to vector<32x64xbf16>
    %cst_42 = arith.constant dense<0.000000e+00> : vector<10x64xf32>
    %100 = tpu.matmul %97, %99, %cst_42 {dimension_numbers = #tpu.dot_dimension_numbers<[1], [0], [0], [1], [0, 0, 1, 1], [], []>} : vector<10x32xbf16>, vector<32x64xbf16>, vector<10x64xf32> -> vector<10x64xf32>
    %101 = vector.broadcast %18 : vector<1x64xf32> to vector<10x64xf32>
    %102 = arith.addf %100, %101 : vector<10x64xf32>
    %cst_43 = arith.constant 5.000000e-01 : f32
    %103 = vector.broadcast %cst_43 : f32 to vector<10x64xf32>
    %104 = arith.mulf %103, %102 : vector<10x64xf32>
    %cst_44 = arith.constant 0.707106769 : f32
    %105 = vector.broadcast %cst_44 : f32 to vector<10x64xf32>
    %106 = arith.mulf %102, %105 : vector<10x64xf32>
    %cst_45 = arith.constant 0.000000e+00 : f32
    %107 = vector.broadcast %cst_45 : f32 to vector<10x64xf32>
    %108 = arith.cmpf oge, %106, %107 : vector<10x64xf32>
    %cst_46 = arith.constant 1.000000e+00 : f32
    %cst_47 = arith.constant -1.000000e+00 : f32
    %109 = vector.broadcast %cst_46 : f32 to vector<10x64xf32>
    %110 = vector.broadcast %cst_47 : f32 to vector<10x64xf32>
    %111 = arith.select %108, %109, %110 : vector<10x64xi1>, vector<10x64xf32>
    %112 = math.absf %106 : vector<10x64xf32>
    %cst_48 = arith.constant 0.327591091 : f32
    %113 = vector.broadcast %cst_48 : f32 to vector<10x64xf32>
    %114 = arith.mulf %113, %112 : vector<10x64xf32>
    %cst_49 = arith.constant 1.000000e+00 : f32
    %115 = vector.broadcast %cst_49 : f32 to vector<10x64xf32>
    %116 = arith.addf %115, %114 : vector<10x64xf32>
    %cst_50 = arith.constant 1.000000e+00 : f32
    %117 = vector.broadcast %cst_50 : f32 to vector<10x64xf32>
    %118 = arith.divf %117, %116 : vector<10x64xf32>
    %cst_51 = arith.constant 1.06140542 : f32
    %119 = vector.broadcast %cst_51 : f32 to vector<10x64xf32>
    %120 = arith.mulf %119, %118 : vector<10x64xf32>
    %cst_52 = arith.constant -1.45315206 : f32
    %121 = vector.broadcast %cst_52 : f32 to vector<10x64xf32>
    %122 = arith.addf %120, %121 : vector<10x64xf32>
    %123 = arith.mulf %122, %118 : vector<10x64xf32>
    %cst_53 = arith.constant 1.42141378 : f32
    %124 = vector.broadcast %cst_53 : f32 to vector<10x64xf32>
    %125 = arith.addf %123, %124 : vector<10x64xf32>
    %126 = arith.mulf %125, %118 : vector<10x64xf32>
    %cst_54 = arith.constant -0.284496725 : f32
    %127 = vector.broadcast %cst_54 : f32 to vector<10x64xf32>
    %128 = arith.addf %126, %127 : vector<10x64xf32>
    %129 = arith.mulf %128, %118 : vector<10x64xf32>
    %cst_55 = arith.constant 0.254829586 : f32
    %130 = vector.broadcast %cst_55 : f32 to vector<10x64xf32>
    %131 = arith.addf %129, %130 : vector<10x64xf32>
    %132 = arith.mulf %131, %118 : vector<10x64xf32>
    %cst_56 = arith.constant 0.000000e+00 : f32
    %133 = vector.broadcast %cst_56 : f32 to vector<10x64xf32>
    %134 = arith.subf %133, %112 : vector<10x64xf32>
    %135 = arith.mulf %134, %112 : vector<10x64xf32>
    %136 = math.exp %135 : vector<10x64xf32>
    %137 = arith.mulf %132, %136 : vector<10x64xf32>
    %cst_57 = arith.constant 1.000000e+00 : f32
    %138 = vector.broadcast %cst_57 : f32 to vector<10x64xf32>
    %139 = arith.subf %138, %137 : vector<10x64xf32>
    %140 = arith.mulf %111, %139 : vector<10x64xf32>
    %cst_58 = arith.constant 1.000000e+00 : f32
    %141 = vector.broadcast %cst_58 : f32 to vector<10x64xf32>
    %142 = arith.addf %141, %140 : vector<10x64xf32>
    %143 = arith.mulf %104, %142 : vector<10x64xf32>
    %144 = arith.truncf %143 : vector<10x64xf32> to vector<10x64xbf16>
    %c0_59 = arith.constant 0 : index
    %c0_60 = arith.constant 0 : index
    %c0_61 = arith.constant 0 : index
    %145 = vector.load %arg11[%c0_59, %c0_60, %c0_61] : memref<2x64x32xbf16, #tpu.memory_space<vmem>>, vector<1x64x32xbf16>
    %146 = vector.shape_cast %145 : vector<1x64x32xbf16> to vector<64x32xbf16>
    %cst_62 = arith.constant dense<0.000000e+00> : vector<10x32xf32>
    %147 = tpu.matmul %144, %146, %cst_62 {dimension_numbers = #tpu.dot_dimension_numbers<[1], [0], [0], [1], [0, 0, 1, 1], [], []>} : vector<10x64xbf16>, vector<64x32xbf16>, vector<10x32xf32> -> vector<10x32xf32>
    %148 = arith.addf %74, %147 : vector<10x32xf32>
    %149 = vector.broadcast %17 : vector<1x32xf32> to vector<10x32xf32>
    %150 = arith.addf %148, %149 : vector<10x32xf32>
    %c1 = arith.constant 1 : index
    %c0_63 = arith.constant 0 : index
    %c0_64 = arith.constant 0 : index
    %151 = vector.load %arg12[%c1, %c0_63, %c0_64] : memref<2x8x128xf32, #tpu.memory_space<vmem>>, vector<1x8x128xf32>
    %152 = vector.shape_cast %151 : vector<1x8x128xf32> to vector<8x128xf32>
    %153 = vector.extract_strided_slice %152 {offsets = [0, 0], sizes = [1, 32], strides = [1, 1]} : vector<8x128xf32> to vector<1x32xf32>
    %154 = vector.extract_strided_slice %152 {offsets = [1, 0], sizes = [1, 32], strides = [1, 1]} : vector<8x128xf32> to vector<1x32xf32>
    %155 = vector.extract_strided_slice %152 {offsets = [2, 0], sizes = [1, 32], strides = [1, 1]} : vector<8x128xf32> to vector<1x32xf32>
    %156 = vector.extract_strided_slice %152 {offsets = [3, 0], sizes = [1, 32], strides = [1, 1]} : vector<8x128xf32> to vector<1x32xf32>
    %157 = vector.extract_strided_slice %152 {offsets = [4, 0], sizes = [1, 32], strides = [1, 1]} : vector<8x128xf32> to vector<1x32xf32>
    %158 = vector.extract_strided_slice %152 {offsets = [5, 0], sizes = [1, 32], strides = [1, 1]} : vector<8x128xf32> to vector<1x32xf32>
    %159 = vector.extract_strided_slice %152 {offsets = [6, 0], sizes = [1, 64], strides = [1, 1]} : vector<8x128xf32> to vector<1x64xf32>
    %cst_65 = arith.constant dense<0.000000e+00> : vector<10xf32>
    %160 = vector.multi_reduction <add>, %150, %cst_65 [1] : vector<10x32xf32> to vector<10xf32>
    %161 = vector.shape_cast %160 : vector<10xf32> to vector<10x1xf32>
    %cst_66 = arith.constant 3.200000e+01 : f32
    %162 = vector.broadcast %cst_66 : f32 to vector<10x1xf32>
    %163 = arith.divf %161, %162 : vector<10x1xf32>
    %164 = vector.broadcast %163 : vector<10x1xf32> to vector<10x32xf32>
    %165 = arith.subf %150, %164 : vector<10x32xf32>
    %166 = arith.mulf %165, %165 : vector<10x32xf32>
    %cst_67 = arith.constant dense<0.000000e+00> : vector<10xf32>
    %167 = vector.multi_reduction <add>, %166, %cst_67 [1] : vector<10x32xf32> to vector<10xf32>
    %168 = vector.shape_cast %167 : vector<10xf32> to vector<10x1xf32>
    %cst_68 = arith.constant 3.200000e+01 : f32
    %169 = vector.broadcast %cst_68 : f32 to vector<10x1xf32>
    %170 = arith.divf %168, %169 : vector<10x1xf32>
    %171 = vector.broadcast %163 : vector<10x1xf32> to vector<10x32xf32>
    %172 = arith.subf %150, %171 : vector<10x32xf32>
    %cst_69 = arith.constant 9.99999974E-6 : f32
    %173 = vector.broadcast %cst_69 : f32 to vector<10x1xf32>
    %174 = arith.addf %170, %173 : vector<10x1xf32>
    %175 = math.rsqrt %174 : vector<10x1xf32>
    %176 = vector.broadcast %175 : vector<10x1xf32> to vector<10x32xf32>
    %177 = arith.mulf %172, %176 : vector<10x32xf32>
    %178 = vector.broadcast %153 : vector<1x32xf32> to vector<10x32xf32>
    %179 = arith.mulf %177, %178 : vector<10x32xf32>
    %180 = vector.broadcast %154 : vector<1x32xf32> to vector<10x32xf32>
    %181 = arith.addf %179, %180 : vector<10x32xf32>
    %182 = arith.truncf %181 : vector<10x32xf32> to vector<10x32xbf16>
    %cst_70 = arith.constant dense<0.000000e+00> : vector<10x128xf32>
    %183 = tpu.matmul %182, %6, %cst_70 {dimension_numbers = #tpu.dot_dimension_numbers<[1], [0], [0], [1], [0, 0, 1, 1], [], []>} : vector<10x32xbf16>, vector<32x128xbf16>, vector<10x128xf32> -> vector<10x128xf32>
    %184 = arith.truncf %183 : vector<10x128xf32> to vector<10x128xbf16>
    %cst_71 = arith.constant dense<0.000000e+00> : vector<40x128xf32>
    %185 = tpu.matmul %7, %184, %cst_71 {dimension_numbers = #tpu.dot_dimension_numbers<[1], [0], [0], [1], [0, 0, 1, 1], [], []>} : vector<40x10xbf16>, vector<10x128xbf16>, vector<40x128xf32> -> vector<40x128xf32>
    %186 = arith.mulf %185, %8 : vector<40x128xf32>
    %187 = arith.truncf %186 : vector<40x128xf32> to vector<40x128xbf16>
    %c1_72 = arith.constant 1 : index
    %c0_73 = arith.constant 0 : index
    %c0_74 = arith.constant 0 : index
    %188 = vector.load %arg9[%c1_72, %c0_73, %c0_74] : memref<2x128x48xbf16, #tpu.memory_space<vmem>>, vector<1x128x48xbf16>
    %189 = vector.shape_cast %188 : vector<1x128x48xbf16> to vector<128x48xbf16>
    %cst_75 = arith.constant dense<0.000000e+00> : vector<40x48xf32>
    %190 = tpu.matmul %187, %189, %cst_75 {dimension_numbers = #tpu.dot_dimension_numbers<[1], [0], [0], [1], [0, 0, 1, 1], [], []>} : vector<40x128xbf16>, vector<128x48xbf16>, vector<40x48xf32> -> vector<40x48xf32>
    %191 = vector.extract_strided_slice %190 {offsets = [0, 0], sizes = [40, 8], strides = [1, 1]} : vector<40x48xf32> to vector<40x8xf32>
    %192 = arith.truncf %191 : vector<40x8xf32> to vector<40x8xbf16>
    %193 = vector.extract_strided_slice %190 {offsets = [0, 8], sizes = [40, 8], strides = [1, 1]} : vector<40x48xf32> to vector<40x8xf32>
    %194 = arith.truncf %193 : vector<40x8xf32> to vector<40x8xbf16>
    %195 = vector.extract_strided_slice %190 {offsets = [0, 16], sizes = [40, 32], strides = [1, 1]} : vector<40x48xf32> to vector<40x32xf32>
    %196 = arith.truncf %195 : vector<40x32xf32> to vector<40x32xbf16>
    %cst_76 = arith.constant dense<0.000000e+00> : vector<40x40xf32>
    %197 = tpu.matmul %192, %194, %cst_76 {dimension_numbers = #tpu.dot_dimension_numbers<[1], [1], [0], [0], [0, 0, 1, 0], [], []>} : vector<40x8xbf16>, vector<40x8xbf16>, vector<40x40xf32> -> vector<40x40xf32>
    %198 = arith.addf %197, %5 : vector<40x40xf32>
    %cst_77 = arith.constant dense<0xFF800000> : vector<40xf32>
    %199 = vector.multi_reduction <maximumf>, %198, %cst_77 [1] : vector<40x40xf32> to vector<40xf32>
    %200 = vector.shape_cast %199 : vector<40xf32> to vector<40x1xf32>
    %201 = vector.broadcast %200 : vector<40x1xf32> to vector<40x40xf32>
    %202 = arith.subf %198, %201 : vector<40x40xf32>
    %203 = math.exp %202 : vector<40x40xf32>
    %cst_78 = arith.constant dense<0.000000e+00> : vector<40xf32>
    %204 = vector.multi_reduction <add>, %203, %cst_78 [1] : vector<40x40xf32> to vector<40xf32>
    %205 = vector.shape_cast %204 : vector<40xf32> to vector<40x1xf32>
    %206 = tpu.reciprocal %205 {approx = true} : vector<40x1xf32> -> vector<40x1xf32>
    %207 = vector.broadcast %206 : vector<40x1xf32> to vector<40x40xf32>
    %208 = arith.mulf %203, %207 : vector<40x40xf32>
    %209 = arith.truncf %208 : vector<40x40xf32> to vector<40x40xbf16>
    %cst_79 = arith.constant dense<0.000000e+00> : vector<40x32xf32>
    %210 = tpu.matmul %209, %196, %cst_79 {dimension_numbers = #tpu.dot_dimension_numbers<[1], [0], [0], [1], [0, 0, 1, 1], [], []>} : vector<40x40xbf16>, vector<40x32xbf16>, vector<40x32xf32> -> vector<40x32xf32>
    %211 = arith.truncf %210 : vector<40x32xf32> to vector<40x32xbf16>
    %cst_80 = arith.constant dense<0.000000e+00> : vector<10x32xf32>
    %212 = tpu.matmul %9, %211, %cst_80 {dimension_numbers = #tpu.dot_dimension_numbers<[1], [0], [0], [1], [0, 0, 1, 1], [], []>} : vector<10x40xbf16>, vector<40x32xbf16>, vector<10x32xf32> -> vector<10x32xf32>
    %213 = arith.addf %150, %212 : vector<10x32xf32>
    %214 = vector.broadcast %155 : vector<1x32xf32> to vector<10x32xf32>
    %215 = arith.addf %213, %214 : vector<10x32xf32>
    %cst_81 = arith.constant dense<0.000000e+00> : vector<10xf32>
    %216 = vector.multi_reduction <add>, %215, %cst_81 [1] : vector<10x32xf32> to vector<10xf32>
    %217 = vector.shape_cast %216 : vector<10xf32> to vector<10x1xf32>
    %cst_82 = arith.constant 3.200000e+01 : f32
    %218 = vector.broadcast %cst_82 : f32 to vector<10x1xf32>
    %219 = arith.divf %217, %218 : vector<10x1xf32>
    %220 = vector.broadcast %219 : vector<10x1xf32> to vector<10x32xf32>
    %221 = arith.subf %215, %220 : vector<10x32xf32>
    %222 = arith.mulf %221, %221 : vector<10x32xf32>
    %cst_83 = arith.constant dense<0.000000e+00> : vector<10xf32>
    %223 = vector.multi_reduction <add>, %222, %cst_83 [1] : vector<10x32xf32> to vector<10xf32>
    %224 = vector.shape_cast %223 : vector<10xf32> to vector<10x1xf32>
    %cst_84 = arith.constant 3.200000e+01 : f32
    %225 = vector.broadcast %cst_84 : f32 to vector<10x1xf32>
    %226 = arith.divf %224, %225 : vector<10x1xf32>
    %227 = vector.broadcast %219 : vector<10x1xf32> to vector<10x32xf32>
    %228 = arith.subf %215, %227 : vector<10x32xf32>
    %cst_85 = arith.constant 9.99999974E-6 : f32
    %229 = vector.broadcast %cst_85 : f32 to vector<10x1xf32>
    %230 = arith.addf %226, %229 : vector<10x1xf32>
    %231 = math.rsqrt %230 : vector<10x1xf32>
    %232 = vector.broadcast %231 : vector<10x1xf32> to vector<10x32xf32>
    %233 = arith.mulf %228, %232 : vector<10x32xf32>
    %234 = vector.broadcast %156 : vector<1x32xf32> to vector<10x32xf32>
    %235 = arith.mulf %233, %234 : vector<10x32xf32>
    %236 = vector.broadcast %157 : vector<1x32xf32> to vector<10x32xf32>
    %237 = arith.addf %235, %236 : vector<10x32xf32>
    %238 = arith.truncf %237 : vector<10x32xf32> to vector<10x32xbf16>
    %c1_86 = arith.constant 1 : index
    %c0_87 = arith.constant 0 : index
    %c0_88 = arith.constant 0 : index
    %239 = vector.load %arg10[%c1_86, %c0_87, %c0_88] : memref<2x32x64xbf16, #tpu.memory_space<vmem>>, vector<1x32x64xbf16>
    %240 = vector.shape_cast %239 : vector<1x32x64xbf16> to vector<32x64xbf16>
    %cst_89 = arith.constant dense<0.000000e+00> : vector<10x64xf32>
    %241 = tpu.matmul %238, %240, %cst_89 {dimension_numbers = #tpu.dot_dimension_numbers<[1], [0], [0], [1], [0, 0, 1, 1], [], []>} : vector<10x32xbf16>, vector<32x64xbf16>, vector<10x64xf32> -> vector<10x64xf32>
    %242 = vector.broadcast %159 : vector<1x64xf32> to vector<10x64xf32>
    %243 = arith.addf %241, %242 : vector<10x64xf32>
    %cst_90 = arith.constant 5.000000e-01 : f32
    %244 = vector.broadcast %cst_90 : f32 to vector<10x64xf32>
    %245 = arith.mulf %244, %243 : vector<10x64xf32>
    %cst_91 = arith.constant 0.707106769 : f32
    %246 = vector.broadcast %cst_91 : f32 to vector<10x64xf32>
    %247 = arith.mulf %243, %246 : vector<10x64xf32>
    %cst_92 = arith.constant 0.000000e+00 : f32
    %248 = vector.broadcast %cst_92 : f32 to vector<10x64xf32>
    %249 = arith.cmpf oge, %247, %248 : vector<10x64xf32>
    %cst_93 = arith.constant 1.000000e+00 : f32
    %cst_94 = arith.constant -1.000000e+00 : f32
    %250 = vector.broadcast %cst_93 : f32 to vector<10x64xf32>
    %251 = vector.broadcast %cst_94 : f32 to vector<10x64xf32>
    %252 = arith.select %249, %250, %251 : vector<10x64xi1>, vector<10x64xf32>
    %253 = math.absf %247 : vector<10x64xf32>
    %cst_95 = arith.constant 0.327591091 : f32
    %254 = vector.broadcast %cst_95 : f32 to vector<10x64xf32>
    %255 = arith.mulf %254, %253 : vector<10x64xf32>
    %cst_96 = arith.constant 1.000000e+00 : f32
    %256 = vector.broadcast %cst_96 : f32 to vector<10x64xf32>
    %257 = arith.addf %256, %255 : vector<10x64xf32>
    %cst_97 = arith.constant 1.000000e+00 : f32
    %258 = vector.broadcast %cst_97 : f32 to vector<10x64xf32>
    %259 = arith.divf %258, %257 : vector<10x64xf32>
    %cst_98 = arith.constant 1.06140542 : f32
    %260 = vector.broadcast %cst_98 : f32 to vector<10x64xf32>
    %261 = arith.mulf %260, %259 : vector<10x64xf32>
    %cst_99 = arith.constant -1.45315206 : f32
    %262 = vector.broadcast %cst_99 : f32 to vector<10x64xf32>
    %263 = arith.addf %261, %262 : vector<10x64xf32>
    %264 = arith.mulf %263, %259 : vector<10x64xf32>
    %cst_100 = arith.constant 1.42141378 : f32
    %265 = vector.broadcast %cst_100 : f32 to vector<10x64xf32>
    %266 = arith.addf %264, %265 : vector<10x64xf32>
    %267 = arith.mulf %266, %259 : vector<10x64xf32>
    %cst_101 = arith.constant -0.284496725 : f32
    %268 = vector.broadcast %cst_101 : f32 to vector<10x64xf32>
    %269 = arith.addf %267, %268 : vector<10x64xf32>
    %270 = arith.mulf %269, %259 : vector<10x64xf32>
    %cst_102 = arith.constant 0.254829586 : f32
    %271 = vector.broadcast %cst_102 : f32 to vector<10x64xf32>
    %272 = arith.addf %270, %271 : vector<10x64xf32>
    %273 = arith.mulf %272, %259 : vector<10x64xf32>
    %cst_103 = arith.constant 0.000000e+00 : f32
    %274 = vector.broadcast %cst_103 : f32 to vector<10x64xf32>
    %275 = arith.subf %274, %253 : vector<10x64xf32>
    %276 = arith.mulf %275, %253 : vector<10x64xf32>
    %277 = math.exp %276 : vector<10x64xf32>
    %278 = arith.mulf %273, %277 : vector<10x64xf32>
    %cst_104 = arith.constant 1.000000e+00 : f32
    %279 = vector.broadcast %cst_104 : f32 to vector<10x64xf32>
    %280 = arith.subf %279, %278 : vector<10x64xf32>
    %281 = arith.mulf %252, %280 : vector<10x64xf32>
    %cst_105 = arith.constant 1.000000e+00 : f32
    %282 = vector.broadcast %cst_105 : f32 to vector<10x64xf32>
    %283 = arith.addf %282, %281 : vector<10x64xf32>
    %284 = arith.mulf %245, %283 : vector<10x64xf32>
    %285 = arith.truncf %284 : vector<10x64xf32> to vector<10x64xbf16>
    %c1_106 = arith.constant 1 : index
    %c0_107 = arith.constant 0 : index
    %c0_108 = arith.constant 0 : index
    %286 = vector.load %arg11[%c1_106, %c0_107, %c0_108] : memref<2x64x32xbf16, #tpu.memory_space<vmem>>, vector<1x64x32xbf16>
    %287 = vector.shape_cast %286 : vector<1x64x32xbf16> to vector<64x32xbf16>
    %cst_109 = arith.constant dense<0.000000e+00> : vector<10x32xf32>
    %288 = tpu.matmul %285, %287, %cst_109 {dimension_numbers = #tpu.dot_dimension_numbers<[1], [0], [0], [1], [0, 0, 1, 1], [], []>} : vector<10x64xbf16>, vector<64x32xbf16>, vector<10x32xf32> -> vector<10x32xf32>
    %289 = arith.addf %215, %288 : vector<10x32xf32>
    %290 = vector.broadcast %158 : vector<1x32xf32> to vector<10x32xf32>
    %291 = arith.addf %289, %290 : vector<10x32xf32>
    %c0_110 = arith.constant 0 : index
    %c0_111 = arith.constant 0 : index
    %292 = vector.load %arg7[%c0_110, %c0_111] : memref<2x10xbf16, #tpu.memory_space<vmem>>, vector<2x10xbf16>
    %293 = arith.truncf %291 : vector<10x32xf32> to vector<10x32xbf16>
    %cst_112 = arith.constant dense<0.000000e+00> : vector<2x32xf32>
    %294 = tpu.matmul %292, %293, %cst_112 {dimension_numbers = #tpu.dot_dimension_numbers<[1], [0], [0], [1], [0, 0, 1, 1], [], []>} : vector<2x10xbf16>, vector<10x32xbf16>, vector<2x32xf32> -> vector<2x32xf32>
    %c0_113 = arith.constant 0 : index
    %c0_114 = arith.constant 0 : index
    %295 = vector.load %arg14[%c0_113, %c0_114] : memref<8x128xf32, #tpu.memory_space<vmem>>, vector<8x128xf32>
    %296 = vector.extract_strided_slice %295 {offsets = [0, 0], sizes = [1, 32], strides = [1, 1]} : vector<8x128xf32> to vector<1x32xf32>
    %297 = vector.extract_strided_slice %295 {offsets = [1, 0], sizes = [1, 32], strides = [1, 1]} : vector<8x128xf32> to vector<1x32xf32>
    %cst_115 = arith.constant dense<0.000000e+00> : vector<2xf32>
    %298 = vector.multi_reduction <add>, %294, %cst_115 [1] : vector<2x32xf32> to vector<2xf32>
    %299 = vector.shape_cast %298 : vector<2xf32> to vector<2x1xf32>
    %cst_116 = arith.constant 3.200000e+01 : f32
    %300 = vector.broadcast %cst_116 : f32 to vector<2x1xf32>
    %301 = arith.divf %299, %300 : vector<2x1xf32>
    %302 = vector.broadcast %301 : vector<2x1xf32> to vector<2x32xf32>
    %303 = arith.subf %294, %302 : vector<2x32xf32>
    %304 = arith.mulf %303, %303 : vector<2x32xf32>
    %cst_117 = arith.constant dense<0.000000e+00> : vector<2xf32>
    %305 = vector.multi_reduction <add>, %304, %cst_117 [1] : vector<2x32xf32> to vector<2xf32>
    %306 = vector.shape_cast %305 : vector<2xf32> to vector<2x1xf32>
    %cst_118 = arith.constant 3.200000e+01 : f32
    %307 = vector.broadcast %cst_118 : f32 to vector<2x1xf32>
    %308 = arith.divf %306, %307 : vector<2x1xf32>
    %309 = vector.broadcast %301 : vector<2x1xf32> to vector<2x32xf32>
    %310 = arith.subf %294, %309 : vector<2x32xf32>
    %cst_119 = arith.constant 9.99999974E-6 : f32
    %311 = vector.broadcast %cst_119 : f32 to vector<2x1xf32>
    %312 = arith.addf %308, %311 : vector<2x1xf32>
    %313 = math.rsqrt %312 : vector<2x1xf32>
    %314 = vector.broadcast %313 : vector<2x1xf32> to vector<2x32xf32>
    %315 = arith.mulf %310, %314 : vector<2x32xf32>
    %316 = vector.broadcast %296 : vector<1x32xf32> to vector<2x32xf32>
    %317 = arith.mulf %315, %316 : vector<2x32xf32>
    %318 = vector.broadcast %297 : vector<1x32xf32> to vector<2x32xf32>
    %319 = arith.addf %317, %318 : vector<2x32xf32>
    %320 = arith.truncf %319 : vector<2x32xf32> to vector<2x32xbf16>
    %c0_120 = arith.constant 0 : index
    %c0_121 = arith.constant 0 : index
    %321 = vector.load %arg13[%c0_120, %c0_121] : memref<32x10xbf16, #tpu.memory_space<vmem>>, vector<32x10xbf16>
    %cst_122 = arith.constant dense<0.000000e+00> : vector<2x10xf32>
    %322 = tpu.matmul %320, %321, %cst_122 {dimension_numbers = #tpu.dot_dimension_numbers<[1], [0], [0], [1], [0, 0, 1, 1], [], []>} : vector<2x32xbf16>, vector<32x10xbf16>, vector<2x10xf32> -> vector<2x10xf32>
    %323 = vector.extract_strided_slice %295 {offsets = [2, 0], sizes = [1, 10], strides = [1, 1]} : vector<8x128xf32> to vector<1x10xf32>
    %324 = vector.broadcast %323 : vector<1x10xf32> to vector<2x10xf32>
    %325 = arith.addf %322, %324 : vector<2x10xf32>
    %c0_123 = arith.constant 0 : index
    %c0_124 = arith.constant 0 : index
    %326 = vector.load %arg15[%c0_123, %c0_124] : memref<2x10xf32, #tpu.memory_space<vmem>>, vector<2x10xf32>
    tpu.vector_store %arg15[%c0_123, %c0_124], %325 {strides = array<i32>} : memref<2x10xf32, #tpu.memory_space<vmem>>, vector<2x10xf32>,
    return
  }
}

</mosaic_0001>

<bundles_post_ra>
// kernel: vit_forward.1
= control target key start
LH: loop header
LB: loop body
LE: loop exit
PB: predicated region body
PF: predicated region fallthrough
CT: control target
= control target key end

     0   :  { %s2539_s0 = inlined_call_operand.vmem [shape: bf16[10,192], index: 0, kind: input, shape index: {}]   ;;  %s2540_s1 = inlined_call_operand.vmem [shape: f32[10,32], index: 1, kind: input, shape index: {}]   ;;  %s2541_s2 = inlined_call_operand.vmem [shape: f32[40,40], index: 2, kind: input, shape index: {}]   ;;  %s2542_s3 = inlined_call_operand.vmem [shape: bf16[32,128], index: 3, kind: input, shape index: {}]   ;;  %s2543_s4 = inlined_call_operand.vmem [shape: bf16[40,10], index: 4, kind: input, shape index: {}]   ;;  %s2544_s5 = inlined_call_operand.vmem [shape: f32[40,128], index: 5, kind: input, shape index: {}]   ;;  %s2545_s6 = inlined_call_operand.vmem [shape: bf16[10,40], index: 6, kind: input, shape index: {}]   ;;  %s2546_s7 = inlined_call_operand.vmem [shape: bf16[2,10], index: 7, kind: input, shape index: {}]   ;;  %s2547_s8 = inlined_call_operand.vmem [shape: bf16[192,32], index: 8, kind: input, shape index: {}]   ;;  %s2548_s9 = inlined_call_operand.vmem [shape: bf16[2,128,48], index: 9, kind: input, shape index: {}]   ;;  %s2549_s10 = inlined_call_operand.vmem [shape: bf16[2,32,64], index: 10, kind: input, shape index: {}]   ;;  %s2550_s11 = inlined_call_operand.vmem [shape: bf16[2,64,32], index: 11, kind: input, shape index: {}]   ;;  %s2551_s12 = inlined_call_operand.vmem [shape: f32[2,8,128], index: 12, kind: input, shape index: {}]   ;;  %s2552_s13 = inlined_call_operand.vmem [shape: bf16[32,10], index: 13, kind: input, shape index: {}]   ;;  %s2553_s14 = inlined_call_operand.vmem [shape: f32[8,128], index: 14, kind: input, shape index: {}]   ;;  %s2554_s15 = inlined_call_operand.hbm [shape: f32[2,10], index: 15, kind: output, shape index: {}]  }
   0x1   :  { %v1817_v0 = vld [vmem:[%s2547_s8 + $0x38] sm:$0xff]  ;;  %v1816_v2 = vld [vmem:[%s2547_s8 + $0x30] sm:$0xff] }
   0x2   :  { %v1821_v1 = vld [vmem:[%s2547_s8 + $0x58] sm:$0xff]  ;;  %165 = vmatpush.bf16.msra.mxu0 %v1817_v0  ;;  %v1820_v3 = vld [vmem:[%s2547_s8 + $0x50] sm:$0xff] }
   0x3   :  { %183 = vmatpush.bf16.msra.mxu1 %v1821_v1 }
   0x4   :  { %20 = vsyncpa [#allocation3], 0  ;;  %v1815_v4 = vld [vmem:[%s2547_s8 + $0x28] sm:$0xff]  ;;  %v1814_v6 = vld [vmem:[%s2547_s8 + $0x20] sm:$0xff]  ;;  %vm161_vm0 = vcmask 523264   ;;  %vm215_vm1 = vcmask 261120  }
   0x5   :  { %v1819_v5 = vld [vmem:[%s2547_s8 + $0x48] sm:$0xff]  ;;  %v1818_v7 = vld [vmem:[%s2547_s8 + $0x40] sm:$0xff]  ;;  %v1813_v10 = vld [vmem:[%s2547_s8 + $0x18] sm:$0xff]  ;;  %vm219_vm2 = vcmask 254976   ;;  %v1964_v30 = vmov 32.0   ;;  %vm328_vm10 = vcmask 1044480  }
   0x6   :  { %166 = vmatpush.bf16.msra.mxu0 %v1816_v2  ;;  %v1808_v8 = vld [vmem:[%s2539_s0 + $0x4] sm:$0xf]  ;;  %v1558_v9 = vld [vmem:[%s2539_s0 + $0x8] sm:$0x10]  ;;  %v1812_v12 = vld [vmem:[%s2547_s8 + $0x10] sm:$0xff]  ;;  %1862 = vrcp.f32 %v1964_v30  ;;  %vm318_vm11 = vcmask 80896  }
   0x7   :  { %184 = vmatpush.bf16.msra.mxu1 %v1820_v3  ;;  %v1561_v11 = vor.u32 %v1808_v8, %v1558_v9  ;;  %v1811_v13 = vld [vmem:[%s2547_s8 + $0x8] sm:$0xff]  ;;  %v1810_v14 = vld [vmem:[%s2547_s8] sm:$0xff]  ;;  %s1965_s22 = smov 120   ;;  %vm462_vm12 = vcmask 64512   ;;  %vm504_vm13 = vcmask 326656   ;;  %vm580_vm14 = vcmask 1043456  }
   0x8   :  { %v1556_v15 = vld [vmem:[%s2539_s0] sm:$0xf]  ;;  %v1809_v16 = vld [vmem:[%s2539_s0 + $0x4] sm:$0x10] }
   0x9   :  { %v1557_v17 = vor.u32 %v1809_v16, %v1556_v15  ;;  %v78_v18 = vld [vmem:[%s2540_s1] sm:$0xff]  ;;  %v79_v24 = vld [vmem:[%s2540_s1 + $0x8] sm:$0x3] }
   0xa   :  { %167 = vmatpush.bf16.msra.mxu0 %v1815_v4  ;;  %v2123_v47 = vld [vmem:[%s2542_s3 + $0x8] sm:$0xff]  ;;  %v2129_v49 = vld [vmem:[%s2542_s3] sm:$0xff] }
   0xb   :  { %185 = vmatpush.bf16.msra.mxu1 %v1819_v5  ;;  %296 = vmatpush.bf16.msra.mxu2 %v2123_v47  ;;  %v2137_v2 = vld [vmem:[%s2551_s12] sm:$0xff] }
   0xc   :  { %v1863_v31 = vpop.eup %1862  ;;  %v268_v5 = vperm.slane %v2137_v2, 0 }
   0xd   :  { %v224_v32 = vmul.f32 32.0, %v1863_v31  ;;  %vm228_vm3 = vweird.f32 %v1863_v31 }
   0xe   :  { %168 = vmatpush.bf16.msra.mxu0 %v1814_v6 }
   0xf   :  { %186 = vmatpush.bf16.msra.mxu1 %v1818_v7  ;;  %v225_v33 = vsub.f32 1.0, %v224_v32  ;;  %297 = vmatpush.bf16.msra.mxu2 %v2129_v49  ;;  %v1828_v32 = vld [vmem:[%s2548_s9 + $0x8] sm:$0xff] }
  0x11   :  { %v226_v34 = vmul.f32 %v1863_v31, %v225_v33  ;;  %v1827_v33 = vld [vmem:[%s2548_s9] sm:$0xff] }
  0x12   :  { %169 = vmatpush.bf16.msra.mxu0 %v1813_v10  ;;  %1610 = vmatmul.msk.bf16.vlgmr.msra.gmra.mxu1 %vm161_vm0, %v1561_v11  ;;  %v271_v10 = vperm.slane %v2137_v2, 1 }
  0x13   :  { %v227_v35 = vadd.f32 %v1863_v31, %v226_v34 }
  0x15   :  { %v2112_v36 = vsel %vm228_vm3, %v1863_v31, %v227_v35  ;;  %v1829_v31 = vld [vmem:[%s2548_s9 + $0x10] sm:$0xff]  ;;  %v2191_v35 = vld [vmem:[%s2544_s5] sm:$0xff] }
  0x16   :  { %170 = vmatpush.bf16.msra.mxu0 %v1812_v12 }
  0x1a   :  { %171 = vmatpush.bf16.msra.mxu0 %v1811_v13 }
  0x1e   :  { %172 = vmatpush.bf16.msra.mxu0 %v1810_v14 }
  0x21   :  { %173 = vmatmul.bf16.vlgmr.msra.gmra.mxu0 %v1557_v17 }
  0x8f   :  { %v188_v19 = vpop.f32.mrf.mxu1 }
  0x97   :  { %v190_v27 = vpop.f32.mrf.mxu1 }
  0x9e   :  { %v174_v20 = vpop.f32.mrf.mxu0 }
  0x9f   :  { %v175_v21 = vadd.f32 %v174_v20, %v78_v18  ;;  %v1834_v20 = vld [vmem:[%s2548_s9 + $0x38] sm:$0xff] }
  0xa0   :  { %427 = vmatpush.bf16.msrb.mxu2 %v1834_v20 }
  0xa1   :  { %v2101_v22 = vadd.f32 %v188_v19, %v175_v21  ;;  %v2146_v19 = vld [vmem:[%s2543_s4] sm:$0xff]  ;;  %v1833_v21 = vld [vmem:[%s2548_s9 + $0x30] sm:$0xff] }
  0xa3   :  { %v216_v23 = vsel %vm215_vm1, %v2101_v22, 0.0 }
  0xa4   :  { %217 = vadd.xlane.f32.xlu0 %v216_v23  ;;  %428 = vmatpush.bf16.msrb.mxu2 %v1833_v21  ;;  %v1832_v23 = vld [vmem:[%s2548_s9 + $0x28] sm:$0xff] }
  0xa6   :  { %v176_v25 = vpop.f32.mrf.mxu0 }
  0xa7   :  { %v177_v26 = vadd.f32 %v176_v25, %v79_v24  ;;  %v1831_v24 = vld [vmem:[%s2548_s9 + $0x20] sm:$0xff]  ;;  %v2165_v25 = vld [vmem:[%s2543_s4 + $0x8] sm:$0xff] }
  0xa8   :  { %429 = vmatpush.bf16.msrb.mxu2 %v1832_v23 }
  0xa9   :  { %v2108_v28 = vadd.f32 %v190_v27, %v177_v26  ;;  %v1830_v26 = vld [vmem:[%s2548_s9 + $0x18] sm:$0xff]  ;;  %v206_v27 = vld [vmem:[%s2543_s4 + $0x10] sm:$0xf]  ;;  %s1966_s4 = smov 112  }
  0xab   :  { %v220_v29 = vsel %vm219_vm2, %v2108_v28, 0.0 }
  0xac   :  { %221 = vadd.xlane.f32.xlu0 %v220_v29  ;;  %430 = vmatpush.bf16.msrb.mxu2 %v1831_v24  ;;  %v314_v29 = vunpack.c.l.b16 %v206_v27  ;;  %v2264_v24 = vld [vmem:[%s2541_s2 + $0x20] sm:$0xff] }
  0xae   :  { %v2175_v30 = vpack.c.b16 %v314_v29, %v314_v29 }
  0xb0   :  { %431 = vmatpush.bf16.msrb.mxu2 %v1830_v26 }
  0xb4   :  { %432 = vmatpush.bf16.msrb.mxu2 %v1829_v31 }
  0xb8   :  { %433 = vmatpush.bf16.msrb.mxu2 %v1828_v32 }
  0xbc   :  { %434 = vmatpush.bf16.msrb.mxu2 %v1827_v33 }
 0x117   :  { %v218_v37 = vpop.xlane.xlu0 %217 }
 0x118   :  { %v230_v38 = vmul.f32 %v2112_v36, %v218_v37  ;;  %v2196_v37 = vld [vmem:[%s2544_s5 + $0x8] sm:$0xff] }
 0x11a   :  { %v232_v39 = vsub.f32 %v2101_v22, %v230_v38 }
 0x11c   :  { %v234_v40 = vmul.f32 %v232_v39, %v232_v39 }
 0x11e   :  { %v236_v41 = vsel %vm215_vm1, %v234_v40, 0.0 }
 0x11f   :  { %237 = vadd.xlane.f32.xlu1 %v236_v41  ;;  %v222_v42 = vpop.xlane.xlu0 %221 }
 0x120   :  { %v231_v43 = vmul.f32 %v2112_v36, %v222_v42 }
 0x122   :  { %v233_v44 = vsub.f32 %v2108_v28, %v231_v43  ;;  %v2203_v43 = vld [vmem:[%s2544_s5 + $0x10] sm:$0xff] }
 0x124   :  { %v235_v45 = vmul.f32 %v233_v44, %v233_v44 }
 0x126   :  { %v239_v46 = vsel %vm219_vm2, %v235_v45, 0.0 }
 0x127   :  { %240 = vadd.xlane.f32.xlu1 %v239_v46 }
 0x192   :  { %v238_v48 = vpop.xlane.xlu1 %237 }
 0x193   :  { %v242_v50 = vmul.f32 %v238_v48, %v2112_v36 }
 0x195   :  { %v244_v51 = vadd.f32 1e-05, %v242_v50 }
 0x197   :  { %1864 = vrsqrt.f32 %v244_v51  ;;  %vm252_vm5 = vweird.f32 %v244_v51 }
 0x19a   :  { %v241_v52 = vpop.xlane.xlu1 %240 }
 0x19b   :  { %v243_v53 = vmul.f32 %v241_v52, %v2112_v36  ;;  %v2215_v52 = vld [vmem:[%s2544_s5 + $0x20] sm:$0xff] }
 0x19d   :  { %v1865_v54 = vpop.eup %1864  ;;  %v245_v55 = vadd.f32 1e-05, %v243_v53 }
 0x19e   :  { %v247_v56 = vmul.f32 %v1865_v54, %v244_v51  ;;  %vm253_vm4 = vweird.f32 %v1865_v54 }
 0x19f   :  { %1866 = vrsqrt.f32 %v245_v55  ;;  %vm254_vm6 = vmor %vm252_vm5, %vm253_vm4  ;;  %vm262_vm8 = vweird.f32 %v245_v55 }
 0x1a0   :  { %v248_v57 = vmul.f32 %v1865_v54, %v247_v56 }
 0x1a2   :  { %v249_v58 = vmul.f32 0.5, %v248_v57 }
 0x1a4   :  { %v250_v59 = vsub.f32 1.5, %v249_v58 }
 0x1a5   :  { %v1867_v60 = vpop.eup %1866 }
 0x1a6   :  { %v251_v61 = vmul.f32 %v1865_v54, %v250_v59  ;;  %v257_v62 = vmul.f32 %v1867_v60, %v245_v55  ;;  %vm263_vm7 = vweird.f32 %v1867_v60 }
 0x1a7   :  { %vm264_vm9 = vmor %vm262_vm8, %vm263_vm7 }
 0x1a8   :  { %v258_v63 = vmul.f32 %v1867_v60, %v257_v62  ;;  %v255_v0 = vsel %vm254_vm6, %v1865_v54, %v251_v61 }
 0x1a9   :  { %v266_v4 = vmul.f32 %v255_v0, %v232_v39 }
 0x1aa   :  { %v259_v1 = vmul.f32 0.5, %v258_v63 }
 0x1ab   :  { %v269_v9 = vmul.f32 %v268_v5, %v266_v4 }
 0x1ac   :  { %v260_v3 = vsub.f32 1.5, %v259_v1 }
 0x1ad   :  { %v272_v12 = vadd.f32 %v271_v10, %v269_v9 }
 0x1ae   :  { %v261_v6 = vmul.f32 %v1867_v60, %v260_v3 }
 0x1b0   :  { %v265_v7 = vsel %vm264_vm9, %v1867_v60, %v261_v6 }
 0x1b1   :  { %v267_v8 = vmul.f32 %v265_v7, %v233_v44  ;;  %v2208_v44 = vld [vmem:[%s2544_s5 + $0x18] sm:$0xff] }
 0x1b3   :  { %v270_v11 = vmul.f32 %v268_v5, %v267_v8  ;;  %v2236_v8 = vld [vmem:[%s2541_s2] sm:$0xff] }
 0x1b5   :  { %v273_v13 = vadd.f32 %v271_v10, %v270_v11 }
 0x1b7   :  { %v274_v14 = vpack.c.bf16 %v273_v13, %v272_v12 }
 0x1b9   :  { %1619 = vmatmul.msk.bf16.vlgmr.msra.gmra.mxu2 %vm215_vm1, %v274_v14  ;;  %v2250_v14 = vld [vmem:[%s2541_s2 + $0x10] sm:$0xff] }
 0x23c   :  { %v299_v15 = vpop.f32.mrf.mxu2 }
 0x244   :  { %v301_v16 = vpop.f32.mrf.mxu2 }
 0x245   :  { %v304_v17 = vpack.c.bf16 %v301_v16, %v299_v15 }
 0x247   :  { %v330_v18 = vsel %vm328_vm10, %v304_v17, 0 }
 0x248   :  { %339 = vmatpush.bf16.msra.mxu3 %v330_v18  ;;  %v2257_v18 = vld [vmem:[%s2541_s2 + $0x18] sm:$0xff] }
 0x24b   :  { %1628 = vmatmul.msk.bf16.vlgmr.msra.gmra.mxu3 %vm318_vm11, %v2146_v19 }
 0x25b   :  { %1629 = vmatmul.msk.bf16.gmra.mxu3 %vm318_vm11, %v2165_v25 }
 0x26b   :  { %1630 = vmatmul.msk.bf16.gmra.mxu3 %vm318_vm11, %v2175_v30 }
 0x2ce   :  { %v341_v34 = vpop.f32.mrf.mxu3 }
 0x2cf   :  { %v355_v39 = vmul.f32 %v341_v34, %v2191_v35 }
 0x2d6   :  { %v343_v38 = vpop.f32.mrf.mxu3 }
 0x2d7   :  { %v356_v40 = vmul.f32 %v343_v38, %v2196_v37 }
 0x2d9   :  { %v360_v41 = vpack.c.bf16 %v356_v40, %v355_v39 }
 0x2db   :  { %435 = vmatmul.bf16.vlgmr.msrb.gmra.mxu2 %v360_v41 }
 0x2de   :  { %v346_v42 = vpop.f32.mrf.mxu3 }
 0x2df   :  { %v357_v46 = vmul.f32 %v346_v42, %v2203_v43 }
 0x2e6   :  { %v348_v45 = vpop.f32.mrf.mxu3 }
 0x2e7   :  { %v358_v48 = vmul.f32 %v348_v45, %v2208_v44 }
 0x2e9   :  { %v361_v50 = vpack.c.bf16 %v358_v48, %v357_v46 }
 0x2eb   :  { %440 = vmatmul.bf16.gmra.mxu2 %v361_v50 }
 0x2ee   :  { %v351_v51 = vpop.f32.mrf.mxu3 }
 0x2ef   :  { %v359_v53 = vmul.f32 %v351_v51, %v2215_v52 }
 0x2f1   :  { %v362_v55 = vpack.c.bf16 %v359_v53, %v359_v53 }
 0x2f6   :  { %v353_v54 = vpop.f32.mrf.mxu3 }
 0x2fb   :  { %445 = vmatmul.bf16.gmra.mxu2 %v362_v55 }
 0x35e   :  { %v436_v56 = vpop.f32.mrf.mxu2 }
 0x366   :  { %v438_v57 = vpop.f32.mrf.mxu2 }
 0x367   :  { %v450_v58 = vpack.c.bf16 %v438_v57, %v436_v56 }
 0x369   :  { %456 = vrot.lane.b32.xlu0 %v450_v58, %s1965_s22 }
 0x36e   :  { %v441_v59 = vpop.f32.mrf.mxu2 }
 0x376   :  { %v443_v60 = vpop.f32.mrf.mxu2 }
 0x377   :  { %v451_v0 = vpack.c.bf16 %v443_v60, %v441_v59 }
 0x37e   :  { %v446_v61 = vpop.f32.mrf.mxu2 }
 0x37f   :  { %v2219_v62 = vpack.c.bf16 %v446_v61, %v446_v61 }
 0x381   :  { %460 = vrot.lane.b32.xlu2 %v2219_v62, %s1965_s22 }
 0x386   :  { %v448_v63 = vpop.f32.mrf.mxu2 }
 0x389   :  { %458 = vrot.lane.b32.xlu2 %v451_v0, %s1965_s22 }
 0x3db   :  { %v461_v1 = vpop.permute.xlu2 %460  ;;  %v457_v6 = vpop.permute.xlu0 %456 }
 0x3dc   :  { %v479_v3 = vsel %vm462_vm12, %v461_v1, 0  ;;  %v473_v7 = vsel %vm462_vm12, %v457_v6, 0 }
 0x3dd   :  { %486 = vmatpush.bf16.xpose.msrb.mxu1 %v479_v3 }
 0x3e3   :  { %v459_v4 = vpop.permute.xlu2 %458 }
 0x3e4   :  { %v476_v5 = vsel %vm462_vm12, %v459_v4, 0 }
 0x3e5   :  { %487 = vmatpush.bf16.xpose.msrb.mxu1 %v476_v5 }
 0x3ed   :  { %488 = vmatpush.bf16.xpose.msrb.mxu1 %v473_v7 }
 0x3f4   :  { %1663 = vmatmul.msk.bf16.vlgmr.msrb.gmra.mxu1 %vm462_vm12, %v450_v58 }
 0x3f5   :  { %922 = vmatpush.bf16.msra.mxu1 %v2123_v47 }
 0x3f9   :  { %923 = vmatpush.bf16.msra.mxu1 %v2129_v49  ;;  %v2243_v49 = vld [vmem:[%s2541_s2 + $0x8] sm:$0xff] }
 0x404   :  { %1664 = vmatmul.msk.bf16.gmra.mxu1 %vm462_vm12, %v451_v0 }
 0x414   :  { %1665 = vmatmul.msk.bf16.gmra.mxu1 %vm462_vm12, %v2219_v62 }
 0x471   :  { %v490_v9 = vpop.f32.mrf.mxu1 }
 0x472   :  { %v491_v10 = vadd.f32 %v490_v9, %v2236_v8 }
 0x474   :  { %v505_v47 = vsel %vm504_vm13, %v491_v10, -inf }
 0x475   :  { %506 = vmax.xlane.f32.xlu1 %v505_v47 }
 0x479   :  { %v492_v11 = vpop.f32.mrf.mxu1 }
 0x47a   :  { %v493_v12 = vadd.f32 %v492_v11, %v2243_v49 }
 0x47c   :  { %v508_v13 = vsel %vm504_vm13, %v493_v12, -inf }
 0x47d   :  { %509 = vmax.xlane.f32.xlu2 %v508_v13 }
 0x481   :  { %v495_v15 = vpop.f32.mrf.mxu1 }
 0x482   :  { %v496_v16 = vadd.f32 %v495_v15, %v2250_v14 }
 0x484   :  { %v511_v17 = vsel %vm504_vm13, %v496_v16, -inf }
 0x485   :  { %512 = vmax.xlane.f32.xlu1 %v511_v17 }
 0x489   :  { %v497_v20 = vpop.f32.mrf.mxu1 }
 0x48a   :  { %v498_v21 = vadd.f32 %v497_v20, %v2257_v18 }
 0x48c   :  { %v514_v23 = vsel %vm504_vm13, %v498_v21, -inf }
 0x48d   :  { %515 = vmax.xlane.f32.xlu1 %v514_v23 }
 0x491   :  { %v500_v26 = vpop.f32.mrf.mxu1 }
 0x492   :  { %v501_v27 = vadd.f32 %v500_v26, %v2264_v24 }
 0x494   :  { %v517_v29 = vsel %vm504_vm13, %v501_v27, -inf }
 0x495   :  { %518 = vmax.xlane.f32.xlu0 %v517_v29  ;;  %565 = vrot.lane.b32.xlu2 %v451_v0, %s1966_s4 }
 0x499   :  { %v502_v31 = vpop.f32.mrf.mxu1 }
 0x4a9   :  { %563 = vrot.lane.b32.xlu0 %v450_v58, %s1966_s4 }
 0x4e8   :  { %v507_v32 = vpop.xlane.xlu1 %506 }
 0x4e9   :  { %v520_v33 = vsub.f32 %v491_v10, %v507_v32 }
 0x4eb   :  { %v525_v34 = vmul.f32 1.442695, %v520_v33 }
 0x4ed   :  { %1868 = vpow2.f32 %v525_v34 }
 0x4f0   :  { %v510_v38 = vpop.xlane.xlu2 %509 }
 0x4f1   :  { %v521_v39 = vsub.f32 %v493_v12, %v510_v38 }
 0x4f3   :  { %v1869_v40 = vpop.eup %1868  ;;  %v527_v41 = vmul.f32 1.442695, %v521_v39 }
 0x4f4   :  { %v535_v42 = vsel %vm504_vm13, %v1869_v40, 0.0 }
 0x4f5   :  { %1870 = vpow2.f32 %v527_v41  ;;  %536 = vadd.xlane.f32.xlu1 %v535_v42 }
 0x4f8   :  { %v513_v45 = vpop.xlane.xlu1 %512  ;;  %v566_v9 = vpop.permute.xlu2 %565 }
 0x4f9   :  { %v522_v61 = vsub.f32 %v496_v16, %v513_v45 }
 0x4fb   :  { %v1871_v46 = vpop.eup %1870  ;;  %v529_v63 = vmul.f32 1.442695, %v522_v61 }
 0x4fc   :  { %v538_v48 = vsel %vm504_vm13, %v1871_v46, 0.0 }
 0x4fd   :  { %539 = vadd.xlane.f32.xlu1 %v538_v48  ;;  %v1826_v48 = vld [vmem:[%s2545_s6] sm:$0x10] }
 0x500   :  { %v516_v50 = vpop.xlane.xlu1 %515 }
 0x501   :  { %v523_v51 = vsub.f32 %v498_v21, %v516_v50 }
 0x503   :  { %v531_v53 = vmul.f32 1.442695, %v523_v51 }
 0x505   :  { %1872 = vpow2.f32 %v531_v53  ;;  %v637_v53 = vperm.slane %v2137_v2, 2 }
 0x508   :  { %v519_v54 = vpop.xlane.xlu0 %518 }
 0x509   :  { %v524_v55 = vsub.f32 %v501_v27, %v519_v54 }
 0x50b   :  { %v1873_v56 = vpop.eup %1872  ;;  %v533_v57 = vmul.f32 1.442695, %v524_v55 }
 0x50c   :  { %v544_v58 = vsel %vm504_vm13, %v1873_v56, 0.0 }
 0x50d   :  { %1874 = vpow2.f32 %v533_v57  ;;  %545 = vadd.xlane.f32.xlu2 %v544_v58 }
 0x50e   :  { %1876 = vpow2.f32 %v529_v63 }
 0x513   :  { %v1875_v59 = vpop.eup %1874 }
 0x514   :  { %v547_v60 = vsel %vm504_vm13, %v1875_v59, 0.0  ;;  %v1877_v0 = vpop.eup %1876 }
 0x515   :  { %548 = vadd.xlane.f32.xlu0 %v547_v60  ;;  %v541_v1 = vsel %vm504_vm13, %v1877_v0, 0.0 }
 0x516   :  { %567 = vrot.lane.b32.xlu1 %v2219_v62, %s1966_s4 }
 0x51b   :  { %v564_v47 = vpop.permute.xlu0 %563 }
 0x540   :  { %542 = vadd.xlane.f32.xlu1 %v541_v1 }
 0x568   :  { %v537_v3 = vpop.xlane.xlu1 %536 }
 0x570   :  { %v540_v4 = vpop.xlane.xlu1 %539 }
 0x571   :  { %1878 = vrcp.f32 %v540_v4 }
 0x572   :  { %1880 = vrcp.f32 %v537_v3 }
 0x577   :  { %v1879_v7 = vpop.eup %1878 }
 0x578   :  { %v1881_v10 = vpop.eup %1880  ;;  %v556_v62 = vmul.f32 %v1879_v7, %v1871_v46  ;;  %v1671_v46 = vld [vmem:[%s2545_s6] sm:$0xf] }
 0x579   :  { %v555_v11 = vmul.f32 %v1881_v10, %v1869_v40  ;;  %v2288_v51 = vor.u32 %v1826_v48, %v1671_v46 }
 0x57b   :  { %v560_v12 = vpack.c.bf16 %v556_v62, %v555_v11 }
 0x580   :  { %v546_v13 = vpop.xlane.xlu2 %545 }
 0x581   :  { %1882 = vrcp.f32 %v546_v13 }
 0x587   :  { %v1883_v16 = vpop.eup %1882 }
 0x588   :  { %v568_v5 = vpop.permute.xlu1 %567  ;;  %v558_v21 = vmul.f32 %v1883_v16, %v1873_v56  ;;  %v549_v23 = vpop.xlane.xlu0 %548 }
 0x589   :  { %v582_v6 = vsel %vm580_vm14, %v568_v5, 0 }
 0x58a   :  { %589 = vmatpush.bf16.msrb.mxu0 %v582_v6 }
 0x58e   :  { %590 = vmatpush.bf16.msrb.mxu0 %v566_v9  ;;  %v1836_v9 = vld [vmem:[%s2549_s10 + $0x8] sm:$0xff] }
 0x592   :  { %591 = vmatpush.bf16.msrb.mxu0 %v564_v47  ;;  %v1835_v47 = vld [vmem:[%s2549_s10] sm:$0xff] }
 0x595   :  { %1666 = vmatmul.msk.bf16.vlgmr.msrb.gmra.mxu0 %vm504_vm13, %v560_v12 }
 0x5b3   :  { %v543_v15 = vpop.xlane.xlu1 %542 }
 0x5b4   :  { %1884 = vrcp.f32 %v543_v15 }
 0x5b5   :  { %1886 = vrcp.f32 %v549_v23 }
 0x5ba   :  { %v1885_v17 = vpop.eup %1884 }
 0x5bb   :  { %v557_v20 = vmul.f32 %v1885_v17, %v1877_v0  ;;  %v1887_v27 = vpop.eup %1886 }
 0x5bc   :  { %v559_v29 = vmul.f32 %v1887_v27, %v1875_v59 }
 0x5bd   :  { %v561_v26 = vpack.c.bf16 %v558_v21, %v557_v20 }
 0x5be   :  { %v562_v31 = vpack.c.bf16 %v559_v29, %v559_v29 }
 0x5bf   :  { %1667 = vmatmul.msk.bf16.gmra.mxu0 %vm504_vm13, %v561_v26 }
 0x5cf   :  { %1668 = vmatmul.msk.bf16.gmra.mxu0 %vm504_vm13, %v562_v31 }
 0x612   :  { %v593_v32 = vpop.f32.mrf.mxu0 }
 0x61a   :  { %v595_v33 = vpop.f32.mrf.mxu0 }
 0x61b   :  { %v607_v50 = vpack.c.bf16 %v595_v33, %v593_v32 }
 0x63c   :  { %v598_v34 = vpop.f32.mrf.mxu0 }
 0x644   :  { %v600_v38 = vpop.f32.mrf.mxu0 }
 0x645   :  { %v608_v42 = vpack.c.bf16 %v600_v38, %v598_v34  ;;  %v684_v38 = vperm.slane %v2137_v2, 3 }
 0x64c   :  { %v603_v39 = vpop.f32.mrf.mxu0 }
 0x64d   :  { %v609_v40 = vpack.c.bf16 %v603_v39, %v603_v39 }
 0x64f   :  { %v619_v41 = vsel %vm580_vm14, %v609_v40, 0 }
 0x650   :  { %626 = vmatpush.bf16.msrb.mxu3 %v619_v41 }
 0x654   :  { %v605_v45 = vpop.f32.mrf.mxu0  ;;  %627 = vmatpush.bf16.msrb.mxu3 %v608_v42  ;;  %v687_v42 = vperm.slane %v2137_v2, 4 }
 0x658   :  { %628 = vmatpush.bf16.msrb.mxu3 %v607_v50 }
 0x65b   :  { %1673 = vmatmul.msk.bf16.vlgmr.msrb.gmra.mxu3 %vm504_vm13, %v2288_v51 }
 0x65c   :  { %717 = vmatpush.bf16.msra.mxu3 %v1836_v9  ;;  %v1840_v9 = vld [vmem:[%s2550_s11 + $0x18] sm:$0xff] }
 0x660   :  { %718 = vmatpush.bf16.msra.mxu3 %v1835_v47 }
 0x664   :  { %845 = vmatpush.bf16.msrb.mxu3 %v1840_v9 }
 0x6de   :  { %v630_v54 = vpop.f32.mrf.mxu3 }
 0x6df   :  { %v635_v55 = vadd.f32 %v630_v54, %v2101_v22 }
 0x6e1   :  { %v2294_v56 = vadd.f32 %v637_v53, %v635_v55  ;;  %v695_v55 = vperm.slane %v2137_v2, 6 }
 0x6e3   :  { %v640_v57 = vsel %vm215_vm1, %v2294_v56, 0.0 }
 0x6e4   :  { %641 = vadd.xlane.f32.xlu2 %v640_v57 }
 0x6e6   :  { %v632_v58 = vpop.f32.mrf.mxu3 }
 0x6e7   :  { %v636_v59 = vadd.f32 %v632_v58, %v2108_v28 }
 0x6e9   :  { %v2299_v60 = vadd.f32 %v637_v53, %v636_v59 }
 0x6eb   :  { %v643_v61 = vsel %vm219_vm2, %v2299_v60, 0.0 }
 0x6ec   :  { %644 = vadd.xlane.f32.xlu1 %v643_v61 }
 0x757   :  { %v642_v63 = vpop.xlane.xlu2 %641 }
 0x758   :  { %v646_v0 = vmul.f32 %v642_v63, %v2112_v36 }
 0x75a   :  { %v648_v22 = vsub.f32 %v2294_v56, %v646_v0 }
 0x75c   :  { %v650_v1 = vmul.f32 %v648_v22, %v648_v22 }
 0x75e   :  { %v652_v3 = vsel %vm215_vm1, %v650_v1, 0.0 }
 0x75f   :  { %653 = vadd.xlane.f32.xlu2 %v652_v3  ;;  %v645_v4 = vpop.xlane.xlu1 %644 }
 0x760   :  { %v647_v5 = vmul.f32 %v645_v4, %v2112_v36 }
 0x762   :  { %v649_v28 = vsub.f32 %v2299_v60, %v647_v5 }
 0x764   :  { %v651_v6 = vmul.f32 %v649_v28, %v649_v28 }
 0x766   :  { %v655_v7 = vsel %vm219_vm2, %v651_v6, 0.0 }
 0x767   :  { %656 = vadd.xlane.f32.xlu1 %v655_v7 }
 0x7d2   :  { %v654_v10 = vpop.xlane.xlu2 %653 }
 0x7d3   :  { %v658_v62 = vmul.f32 %v654_v10, %v2112_v36 }
 0x7d5   :  { %v660_v11 = vadd.f32 1e-05, %v658_v62 }
 0x7d7   :  { %1888 = vrsqrt.f32 %v660_v11  ;;  %vm668_vm3 = vweird.f32 %v660_v11 }
 0x7da   :  { %v657_v12 = vpop.xlane.xlu1 %656 }
 0x7db   :  { %v659_v13 = vmul.f32 %v657_v12, %v2112_v36  ;;  %v1839_v12 = vld [vmem:[%s2550_s11 + $0x10] sm:$0xff] }
 0x7dc   :  { %846 = vmatpush.bf16.msrb.mxu3 %v1839_v12 }
 0x7dd   :  { %v1889_v15 = vpop.eup %1888  ;;  %v661_v16 = vadd.f32 1e-05, %v659_v13 }
 0x7de   :  { %v663_v17 = vmul.f32 %v1889_v15, %v660_v11  ;;  %vm669_vm15 = vweird.f32 %v1889_v15 }
 0x7df   :  { %1890 = vrsqrt.f32 %v661_v16  ;;  %vm670_vm4 = vmor %vm668_vm3, %vm669_vm15  ;;  %vm678_vm6 = vweird.f32 %v661_v16 }
 0x7e0   :  { %v664_v20 = vmul.f32 %v1889_v15, %v663_v17 }
 0x7e2   :  { %v665_v21 = vmul.f32 0.5, %v664_v20 }
 0x7e4   :  { %v666_v23 = vsub.f32 1.5, %v665_v21 }
 0x7e5   :  { %v1891_v26 = vpop.eup %1890 }
 0x7e6   :  { %v667_v27 = vmul.f32 %v1889_v15, %v666_v23  ;;  %v673_v29 = vmul.f32 %v1891_v26, %v661_v16  ;;  %vm679_vm5 = vweird.f32 %v1891_v26  ;;  %v1838_v23 = vld [vmem:[%s2550_s11 + $0x8] sm:$0xff] }
 0x7e7   :  { %vm680_vm7 = vmor %vm678_vm6, %vm679_vm5  ;;  %847 = vmatpush.bf16.msrb.mxu3 %v1838_v23 }
 0x7e8   :  { %v674_v31 = vmul.f32 %v1891_v26, %v673_v29  ;;  %v671_v32 = vsel %vm670_vm4, %v1889_v15, %v667_v27 }
 0x7e9   :  { %v682_v39 = vmul.f32 %v671_v32, %v648_v22 }
 0x7ea   :  { %v675_v33 = vmul.f32 0.5, %v674_v31 }
 0x7eb   :  { %v685_v45 = vmul.f32 %v684_v38, %v682_v39 }
 0x7ec   :  { %v676_v34 = vsub.f32 1.5, %v675_v33 }
 0x7ed   :  { %v688_v50 = vadd.f32 %v687_v42, %v685_v45 }
 0x7ee   :  { %v677_v40 = vmul.f32 %v1891_v26, %v676_v34 }
 0x7f0   :  { %v681_v41 = vsel %vm680_vm7, %v1891_v26, %v677_v40 }
 0x7f1   :  { %v683_v46 = vmul.f32 %v681_v41, %v649_v28 }
 0x7f3   :  { %v686_v48 = vmul.f32 %v684_v38, %v683_v46  ;;  %v1837_v38 = vld [vmem:[%s2550_s11] sm:$0xff] }
 0x7f4   :  { %848 = vmatpush.bf16.msrb.mxu3 %v1837_v38 }
 0x7f5   :  { %v689_v53 = vadd.f32 %v687_v42, %v686_v48 }
 0x7f7   :  { %v690_v54 = vpack.c.bf16 %v689_v53, %v688_v50 }
 0x7f9   :  { %1682 = vmatmul.msk.bf16.vlgmr.msra.gmra.mxu3 %vm215_vm1, %v690_v54 }
 0x87c   :  { %v720_v57 = vpop.f32.mrf.mxu3 }
 0x87d   :  { %v2321_v58 = vadd.f32 %v720_v57, %v695_v55 }
 0x87f   :  { %v2324_v59 = vmul.f32 0.70710677, %v2321_v58 }
 0x881   :  { %v733_v61 = vand.u32 2147483647, %v2324_v59 }
 0x883   :  { %v735_v63 = vmul.f32 0.3275911, %v733_v61  ;;  %v787_v27 = vsub.f32 0.0, %v733_v61 }
 0x884   :  { %v722_v0 = vpop.f32.mrf.mxu3 }
 0x885   :  { %v737_v22 = vadd.f32 1.0, %v735_v63  ;;  %v2327_v1 = vadd.f32 %v722_v0, %v695_v55  ;;  %v789_v40 = vmul.f32 %v787_v27, %v733_v61 }
 0x887   :  { %1892 = vrcp.f32 %v737_v22  ;;  %v2330_v3 = vmul.f32 0.70710677, %v2327_v1  ;;  %v750_v62 = vand.u32 2147483648, %v737_v22  ;;  %v748_v11 = vand.u32 2147483647, %v737_v22 }
 0x888   :  { %vm744_vm9 = vweird.f32 %v737_v22  ;;  %v791_v50 = vmul.f32 1.442695, %v789_v40 }
 0x889   :  { %v734_v4 = vand.u32 2147483647, %v2330_v3  ;;  %v751_v15 = vor.u32 1.1754944e-38, %v750_v62  ;;  %vm749_vm3 = vcmp.eq.f32.partialorder %v748_v11, 8.507059e+37 }
 0x88b   :  { %v736_v5 = vmul.f32 0.3275911, %v734_v4  ;;  %v788_v54 = vsub.f32 0.0, %v734_v4 }
 0x88d   :  { %v1893_v28 = vpop.eup %1892  ;;  %v738_v7 = vadd.f32 1.0, %v736_v5 }
 0x88e   :  { %v740_v6 = vmul.f32 %v1893_v28, %v737_v22  ;;  %vm745_vm8 = vweird.f32 %v1893_v28  ;;  %v790_v22 = vmul.f32 %v788_v54, %v734_v4 }
 0x88f   :  { %1894 = vrcp.f32 %v738_v7  ;;  %vm746_vm15 = vmor %vm744_vm9, %vm745_vm8  ;;  %v765_v32 = vand.u32 2147483648, %v738_v7  ;;  %v763_v34 = vand.u32 2147483647, %v738_v7  ;;  %vm759_vm5 = vweird.f32 %v738_v7 }
 0x890   :  { %v741_v10 = vsub.f32 1.0, %v740_v6  ;;  %1896 = vpow2.f32 %v791_v50  ;;  %vm729_vm8 = vcmp.ge.f32.partialorder %v2324_v59, 0.0  ;;  %vm730_vm9 = vcmp.ge.f32.partialorder %v2330_v3, 0.0 }
 0x891   :  { %v766_v45 = vor.u32 1.1754944e-38, %v765_v32  ;;  %vm764_vm7 = vcmp.eq.f32.partialorder %v763_v34, 8.507059e+37  ;;  %v726_v59 = vmul.f32 0.5, %v2327_v1 }
 0x892   :  { %v742_v47 = vmul.f32 %v1893_v28, %v741_v10 }
 0x894   :  { %v743_v13 = vadd.f32 %v1893_v28, %v742_v47 }
 0x895   :  { %v1895_v16 = vpop.eup %1894 }
 0x896   :  { %v747_v17 = vsel %vm746_vm15, %v1893_v28, %v743_v13  ;;  %v755_v21 = vmul.f32 %v1895_v16, %v738_v7  ;;  %vm760_vm4 = vweird.f32 %v1895_v16  ;;  %v793_v7 = vmul.f32 1.442695, %v790_v22  ;;  %v1897_v10 = vpop.eup %1896 }
 0x897   :  { %v752_v20 = vsel %vm749_vm3, %v751_v15, %v747_v17  ;;  %vm761_vm6 = vmor %vm759_vm5, %vm760_vm4  ;;  %v1967_v17 = vmov -1.0  }
 0x898   :  { %v769_v26 = vmul.f32 1.0614054, %v752_v20  ;;  %v756_v29 = vsub.f32 1.0, %v755_v21  ;;  %1898 = vpow2.f32 %v793_v7  ;;  %v731_v4 = vsel %vm729_vm8, 1.0, %v1967_v17 }
 0x89a   :  { %v771_v31 = vadd.f32 -1.4531521, %v769_v26  ;;  %v757_v33 = vmul.f32 %v1895_v16, %v756_v29  ;;  %v732_v26 = vsel %vm730_vm9, 1.0, %v1967_v17 }
 0x89c   :  { %v773_v39 = vmul.f32 %v771_v31, %v752_v20  ;;  %v758_v41 = vadd.f32 %v1895_v16, %v757_v33  ;;  %v725_v31 = vmul.f32 0.5, %v2321_v58 }
 0x89e   :  { %v775_v42 = vadd.f32 1.4214138, %v773_v39  ;;  %v762_v46 = vsel %vm761_vm6, %v1895_v16, %v758_v41  ;;  %v1899_v16 = vpop.eup %1898  ;;  %v857_v39 = vperm.slane %v2137_v2, 5 }
 0x89f   :  { %v767_v53 = vsel %vm764_vm7, %v766_v45, %v762_v46 }
 0x8a0   :  { %v777_v48 = vmul.f32 %v775_v42, %v752_v20  ;;  %v770_v55 = vmul.f32 1.0614054, %v767_v53 }
 0x8a2   :  { %v779_v57 = vadd.f32 -0.28449672, %v777_v48  ;;  %v772_v63 = vadd.f32 -1.4531521, %v770_v55 }
 0x8a4   :  { %v781_v0 = vmul.f32 %v779_v57, %v752_v20  ;;  %v774_v5 = vmul.f32 %v772_v63, %v767_v53 }
 0x8a6   :  { %v783_v61 = vadd.f32 0.2548296, %v781_v0  ;;  %v776_v28 = vadd.f32 1.4214138, %v774_v5 }
 0x8a8   :  { %v785_v6 = vmul.f32 %v783_v61, %v752_v20  ;;  %v778_v9 = vmul.f32 %v776_v28, %v767_v53 }
 0x8aa   :  { %v795_v62 = vmul.f32 %v1897_v10, %v785_v6  ;;  %v780_v47 = vadd.f32 -0.28449672, %v778_v9 }
 0x8ac   :  { %v782_v11 = vmul.f32 %v780_v47, %v767_v53  ;;  %v797_v12 = vsub.f32 1.0, %v795_v62 }
 0x8ae   :  { %v784_v13 = vadd.f32 0.2548296, %v782_v11  ;;  %v799_v21 = vmul.f32 %v797_v12, %v731_v4 }
 0x8b0   :  { %v786_v15 = vmul.f32 %v784_v13, %v767_v53  ;;  %v801_v27 = vadd.f32 1.0, %v799_v21 }
 0x8b2   :  { %v796_v20 = vmul.f32 %v1899_v16, %v786_v15  ;;  %v803_v33 = vmul.f32 %v801_v27, %v725_v31  ;;  %v2374_v16 = vld [vmem:[%s2551_s12 + $0x8] sm:$0xff] }
 0x8b3   :  { %v909_v31 = vperm.slane %v2374_v16, 1 }
 0x8b4   :  { %v798_v23 = vsub.f32 1.0, %v796_v20 }
 0x8b6   :  { %v800_v29 = vmul.f32 %v798_v23, %v732_v26  ;;  %v906_v23 = vperm.slane %v2374_v16, 0 }
 0x8b8   :  { %v802_v32 = vadd.f32 1.0, %v800_v29 }
 0x8ba   :  { %v804_v34 = vmul.f32 %v802_v32, %v726_v59 }
 0x8bc   :  { %v805_v38 = vpack.c.bf16 %v804_v34, %v803_v33 }
 0x8be   :  { %1699 = vmatmul.msk.bf16.vlgmr.msrb.gmra.mxu3 %vm161_vm0, %v805_v38 }
 0x941   :  { %v850_v40 = vpop.f32.mrf.mxu3 }
 0x942   :  { %v855_v3 = vadd.f32 %v850_v40, %v2294_v56 }
 0x944   :  { %v2354_v41 = vadd.f32 %v857_v39, %v855_v3 }
 0x946   :  { %v862_v42 = vsel %vm215_vm1, %v2354_v41, 0.0 }
 0x947   :  { %863 = vadd.xlane.f32.xlu2 %v862_v42 }
 0x949   :  { %v852_v58 = vpop.f32.mrf.mxu3 }
 0x94a   :  { %v856_v1 = vadd.f32 %v852_v58, %v2299_v60 }
 0x94c   :  { %v2359_v45 = vadd.f32 %v857_v39, %v856_v1  ;;  %v1848_v1 = vld [vmem:[%s2548_s9 + $0x78] sm:$0xff] }
 0x94d   :  { %1030 = vmatpush.bf16.msra.mxu0 %v1848_v1 }
 0x94e   :  { %v865_v46 = vsel %vm219_vm2, %v2359_v45, 0.0 }
 0x94f   :  { %866 = vadd.xlane.f32.xlu1 %v865_v46  ;;  %v1847_v46 = vld [vmem:[%s2548_s9 + $0x70] sm:$0xff] }
 0x951   :  { %1031 = vmatpush.bf16.msra.mxu0 %v1847_v46 }
 0x9ba   :  { %v864_v48 = vpop.xlane.xlu2 %863 }
 0x9bb   :  { %v868_v2 = vmul.f32 %v864_v48, %v2112_v36  ;;  %v1846_v48 = vld [vmem:[%s2548_s9 + $0x68] sm:$0xff] }
 0x9bc   :  { %1032 = vmatpush.bf16.msra.mxu0 %v1846_v48 }
 0x9bd   :  { %v870_v56 = vsub.f32 %v2354_v41, %v868_v2  ;;  %v1845_v2 = vld [vmem:[%s2548_s9 + $0x60] sm:$0xff] }
 0x9bf   :  { %v872_v50 = vmul.f32 %v870_v56, %v870_v56 }
 0x9c0   :  { %1033 = vmatpush.bf16.msra.mxu0 %v1845_v2 }
 0x9c1   :  { %v874_v53 = vsel %vm215_vm1, %v872_v50, 0.0  ;;  %v1842_v50 = vld [vmem:[%s2548_s9 + $0x48] sm:$0xff] }
 0x9c2   :  { %875 = vadd.xlane.f32.xlu0 %v874_v53  ;;  %v867_v54 = vpop.xlane.xlu1 %866  ;;  %v1841_v53 = vld [vmem:[%s2548_s9 + $0x40] sm:$0xff] }
 0x9c3   :  { %v869_v55 = vmul.f32 %v867_v54, %v2112_v36 }
 0x9c5   :  { %v871_v60 = vsub.f32 %v2359_v45, %v869_v55 }
 0x9c7   :  { %v873_v57 = vmul.f32 %v871_v60, %v871_v60 }
 0x9c9   :  { %v877_v63 = vsel %vm219_vm2, %v873_v57, 0.0 }
 0x9ca   :  { %878 = vadd.xlane.f32.xlu2 %v877_v63 }
 0xa35   :  { %v876_v0 = vpop.xlane.xlu0 %875 }
 0xa36   :  { %v880_v22 = vmul.f32 %v876_v0, %v2112_v36 }
 0xa38   :  { %v882_v5 = vadd.f32 1e-05, %v880_v22 }
 0xa3a   :  { %1900 = vrsqrt.f32 %v882_v5  ;;  %vm890_vm3 = vweird.f32 %v882_v5 }
 0xa3d   :  { %v879_v61 = vpop.xlane.xlu2 %878 }
 0xa3e   :  { %v881_v28 = vmul.f32 %v879_v61, %v2112_v36 }
 0xa40   :  { %v1901_v6 = vpop.eup %1900  ;;  %v883_v7 = vadd.f32 1e-05, %v881_v28 }
 0xa41   :  { %v885_v9 = vmul.f32 %v1901_v6, %v882_v5  ;;  %vm891_vm15 = vweird.f32 %v1901_v6 }
 0xa42   :  { %1902 = vrsqrt.f32 %v883_v7  ;;  %vm892_vm4 = vmor %vm890_vm3, %vm891_vm15  ;;  %vm900_vm6 = vweird.f32 %v883_v7 }
 0xa43   :  { %v886_v10 = vmul.f32 %v1901_v6, %v885_v9 }
 0xa45   :  { %v887_v62 = vmul.f32 0.5, %v886_v10 }
 0xa47   :  { %v888_v47 = vsub.f32 1.5, %v887_v62 }
 0xa48   :  { %v1903_v11 = vpop.eup %1902 }
 0xa49   :  { %v889_v12 = vmul.f32 %v1901_v6, %v888_v47  ;;  %v895_v13 = vmul.f32 %v1903_v11, %v883_v7  ;;  %vm901_vm5 = vweird.f32 %v1903_v11 }
 0xa4a   :  { %vm902_vm7 = vmor %vm900_vm6, %vm901_vm5 }
 0xa4b   :  { %v896_v15 = vmul.f32 %v1903_v11, %v895_v13  ;;  %v893_v4 = vsel %vm892_vm4, %v1901_v6, %v889_v12 }
 0xa4c   :  { %v904_v26 = vmul.f32 %v893_v4, %v870_v56  ;;  %v1843_v56 = vld [vmem:[%s2548_s9 + $0x50] sm:$0xff] }
 0xa4d   :  { %v897_v21 = vmul.f32 0.5, %v896_v15 }
 0xa4e   :  { %v907_v59 = vmul.f32 %v906_v23, %v904_v26 }
 0xa4f   :  { %v898_v20 = vsub.f32 1.5, %v897_v21 }
 0xa50   :  { %v910_v34 = vadd.f32 %v909_v31, %v907_v59 }
 0xa51   :  { %v899_v27 = vmul.f32 %v1903_v11, %v898_v20 }
 0xa53   :  { %v903_v29 = vsel %vm902_vm7, %v1903_v11, %v899_v27 }
 0xa54   :  { %v905_v32 = vmul.f32 %v903_v29, %v871_v60 }
 0xa56   :  { %v908_v33 = vmul.f32 %v906_v23, %v905_v32 }
 0xa58   :  { %v911_v38 = vadd.f32 %v909_v31, %v908_v33 }
 0xa5a   :  { %v912_v39 = vpack.c.bf16 %v911_v38, %v910_v34 }
 0xa5c   :  { %1701 = vmatmul.msk.bf16.vlgmr.msra.gmra.mxu1 %vm215_vm1, %v912_v39 }
 0xad9   :  { %v925_v40 = vpop.f32.mrf.mxu1 }
 0xae1   :  { %v927_v3 = vpop.f32.mrf.mxu1 }
 0xae2   :  { %v930_v42 = vpack.c.bf16 %v927_v3, %v925_v40 }
 0xae4   :  { %v932_v58 = vsel %vm328_vm10, %v930_v42, 0 }
 0xae5   :  { %941 = vmatpush.bf16.msra.mxu2 %v932_v58 }
 0xae8   :  { %1702 = vmatmul.msk.bf16.vlgmr.msra.gmra.mxu2 %vm318_vm11, %v2146_v19  ;;  %v1844_v19 = vld [vmem:[%s2548_s9 + $0x58] sm:$0xff] }
 0xae9   :  { %1034 = vmatpush.bf16.msra.mxu0 %v1844_v19 }
 0xaed   :  { %1035 = vmatpush.bf16.msra.mxu0 %v1843_v56 }
 0xaf1   :  { %1036 = vmatpush.bf16.msra.mxu0 %v1842_v50 }
 0xaf5   :  { %1037 = vmatpush.bf16.msra.mxu0 %v1841_v53 }
 0xaf8   :  { %1703 = vmatmul.msk.bf16.gmra.mxu2 %vm318_vm11, %v2165_v25 }
 0xb08   :  { %1704 = vmatmul.msk.bf16.gmra.mxu2 %vm318_vm11, %v2175_v30 }
 0xb6b   :  { %v943_v25 = vpop.f32.mrf.mxu2 }
 0xb6c   :  { %v957_v55 = vmul.f32 %v943_v25, %v2191_v35 }
 0xb73   :  { %v945_v54 = vpop.f32.mrf.mxu2 }
 0xb74   :  { %v958_v30 = vmul.f32 %v945_v54, %v2196_v37 }
 0xb76   :  { %v962_v60 = vpack.c.bf16 %v958_v30, %v957_v55 }
 0xb78   :  { %1038 = vmatmul.bf16.vlgmr.msra.gmra.mxu0 %v962_v60 }
 0xb7b   :  { %v948_v57 = vpop.f32.mrf.mxu2 }
 0xb7c   :  { %v959_v0 = vmul.f32 %v948_v57, %v2203_v43 }
 0xb83   :  { %v950_v63 = vpop.f32.mrf.mxu2 }
 0xb84   :  { %v960_v22 = vmul.f32 %v950_v63, %v2208_v44 }
 0xb86   :  { %v963_v5 = vpack.c.bf16 %v960_v22, %v959_v0 }
 0xb88   :  { %1043 = vmatmul.bf16.gmra.mxu0 %v963_v5 }
 0xb8b   :  { %v953_v61 = vpop.f32.mrf.mxu2 }
 0xb8c   :  { %v961_v28 = vmul.f32 %v953_v61, %v2215_v52 }
 0xb8e   :  { %v964_v7 = vpack.c.bf16 %v961_v28, %v961_v28 }
 0xb93   :  { %v955_v6 = vpop.f32.mrf.mxu2 }
 0xb98   :  { %1048 = vmatmul.bf16.gmra.mxu0 %v964_v7 }
 0xbf5   :  { %v1039_v9 = vpop.f32.mrf.mxu0 }
 0xbfd   :  { %v1041_v35 = vpop.f32.mrf.mxu0 }
 0xbfe   :  { %v2415_v10 = vpack.c.bf16 %v1041_v35, %v1039_v9 }
 0xc00   :  { %1059 = vrot.lane.b32.xlu2 %v2415_v10, %s1965_s22 }
 0xc05   :  { %v1044_v37 = vpop.f32.mrf.mxu0 }
 0xc0d   :  { %v1046_v62 = vpop.f32.mrf.mxu0 }
 0xc0e   :  { %v1054_v43 = vpack.c.bf16 %v1046_v62, %v1044_v37 }
 0xc10   :  { %1061 = vrot.lane.b32.xlu0 %v1054_v43, %s1965_s22 }
 0xc15   :  { %v1049_v44 = vpop.f32.mrf.mxu0 }
 0xc16   :  { %v1055_v47 = vpack.c.bf16 %v1049_v44, %v1049_v44 }
 0xc18   :  { %1063 = vrot.lane.b32.xlu1 %v1055_v47, %s1965_s22 }
 0xc1d   :  { %v1051_v52 = vpop.f32.mrf.mxu0 }
 0xc5a   :  { %v1060_v4 = vpop.permute.xlu2 %1059 }
 0xc5b   :  { %v1075_v21 = vsel %vm462_vm12, %v1060_v4, 0 }
 0xc82   :  { %v1062_v13 = vpop.permute.xlu0 %1061 }
 0xc83   :  { %v1078_v15 = vsel %vm462_vm12, %v1062_v13, 0 }
 0xc8a   :  { %v1064_v11 = vpop.permute.xlu1 %1063 }
 0xc8b   :  { %v1081_v12 = vsel %vm462_vm12, %v1064_v11, 0 }
 0xc8c   :  { %1088 = vmatpush.bf16.xpose.msra.mxu3 %v1081_v12 }
 0xc94   :  { %1089 = vmatpush.bf16.xpose.msra.mxu3 %v1078_v15 }
 0xc9c   :  { %1090 = vmatpush.bf16.xpose.msra.mxu3 %v1075_v21 }
 0xca3   :  { %1753 = vmatmul.msk.bf16.vlgmr.msra.gmra.mxu3 %vm462_vm12, %v2415_v10 }
 0xcb3   :  { %1754 = vmatmul.msk.bf16.gmra.mxu3 %vm462_vm12, %v1054_v43 }
 0xcc3   :  { %1755 = vmatmul.msk.bf16.gmra.mxu3 %vm462_vm12, %v1055_v47 }
 0xd26   :  { %v1092_v20 = vpop.f32.mrf.mxu3 }
 0xd27   :  { %v1093_v23 = vadd.f32 %v1092_v20, %v2236_v8 }
 0xd29   :  { %v1106_v26 = vsel %vm504_vm13, %v1093_v23, -inf }
 0xd2a   :  { %1107 = vmax.xlane.f32.xlu0 %v1106_v26 }
 0xd2e   :  { %v1094_v27 = vpop.f32.mrf.mxu3 }
 0xd2f   :  { %v1095_v29 = vadd.f32 %v1094_v27, %v2243_v49 }
 0xd31   :  { %v1109_v31 = vsel %vm504_vm13, %v1095_v29, -inf }
 0xd32   :  { %1110 = vmax.xlane.f32.xlu1 %v1109_v31 }
 0xd36   :  { %v1097_v59 = vpop.f32.mrf.mxu3 }
 0xd37   :  { %v1098_v32 = vadd.f32 %v1097_v59, %v2250_v14 }
 0xd39   :  { %v1112_v33 = vsel %vm504_vm13, %v1098_v32, -inf }
 0xd3a   :  { %1113 = vmax.xlane.f32.xlu2 %v1112_v33 }
 0xd3e   :  { %v1099_v34 = vpop.f32.mrf.mxu3 }
 0xd3f   :  { %v1100_v38 = vadd.f32 %v1099_v34, %v2257_v18 }
 0xd41   :  { %v1115_v8 = vsel %vm504_vm13, %v1100_v38, -inf }
 0xd42   :  { %1116 = vmax.xlane.f32.xlu0 %v1115_v8 }
 0xd46   :  { %v1102_v39 = vpop.f32.mrf.mxu3 }
 0xd47   :  { %v1103_v40 = vadd.f32 %v1102_v39, %v2264_v24 }
 0xd49   :  { %v1118_v49 = vsel %vm504_vm13, %v1103_v40, -inf }
 0xd4a   :  { %1119 = vmax.xlane.f32.xlu1 %v1118_v49 }
 0xd4e   :  { %v1104_v3 = vpop.f32.mrf.mxu3 }
 0xd4f   :  { %v1229_v3 = vperm.slane %v2374_v16, 2 }
 0xd63   :  { %1168 = vrot.lane.b32.xlu1 %v1055_v47, %s1966_s4 }
 0xd9d   :  { %v1108_v42 = vpop.xlane.xlu0 %1107 }
 0xd9e   :  { %v1121_v14 = vsub.f32 %v1093_v23, %v1108_v42 }
 0xda0   :  { %v1126_v58 = vmul.f32 1.442695, %v1121_v14 }
 0xda2   :  { %1904 = vpow2.f32 %v1126_v58 }
 0xda5   :  { %v1111_v1 = vpop.xlane.xlu1 %1110 }
 0xda6   :  { %v1122_v46 = vsub.f32 %v1095_v29, %v1111_v1 }
 0xda8   :  { %v1905_v48 = vpop.eup %1904  ;;  %v1128_v18 = vmul.f32 1.442695, %v1122_v46 }
 0xda9   :  { %v1136_v2 = vsel %vm504_vm13, %v1905_v48, 0.0 }
 0xdaa   :  { %1906 = vpow2.f32 %v1128_v18  ;;  %1137 = vadd.xlane.f32.xlu0 %v1136_v2 }
 0xdad   :  { %v1114_v30 = vpop.xlane.xlu2 %1113 }
 0xdae   :  { %v1123_v57 = vsub.f32 %v1098_v32, %v1114_v30 }
 0xdb0   :  { %v1907_v19 = vpop.eup %1906  ;;  %v1130_v0 = vmul.f32 1.442695, %v1123_v57 }
 0xdb1   :  { %v1139_v24 = vsel %vm504_vm13, %v1907_v19, 0.0 }
 0xdb2   :  { %1140 = vadd.xlane.f32.xlu2 %v1139_v24 }
 0xdb5   :  { %v1117_v56 = vpop.xlane.xlu0 %1116 }
 0xdb6   :  { %v1124_v50 = vsub.f32 %v1100_v38, %v1117_v56 }
 0xdb8   :  { %v1132_v53 = vmul.f32 1.442695, %v1124_v50 }
 0xdba   :  { %1908 = vpow2.f32 %v1132_v53 }
 0xdbb   :  { %1910 = vpow2.f32 %v1130_v0 }
 0xdbd   :  { %v1120_v55 = vpop.xlane.xlu1 %1119 }
 0xdbe   :  { %1166 = vrot.lane.b32.xlu0 %v1054_v43, %s1966_s4  ;;  %v1125_v22 = vsub.f32 %v1103_v40, %v1120_v55  ;;  %v1850_v55 = vld [vmem:[%s2549_s10 + $0x18] sm:$0xff] }
 0xdbf   :  { %1310 = vmatpush.bf16.msrb.mxu0 %v1850_v55 }
 0xdc0   :  { %v1909_v25 = vpop.eup %1908  ;;  %v1134_v61 = vmul.f32 1.442695, %v1125_v22 }
 0xdc1   :  { %v1145_v54 = vsel %vm504_vm13, %v1909_v25, 0.0  ;;  %v1911_v5 = vpop.eup %1910 }
 0xdc2   :  { %1146 = vadd.xlane.f32.xlu1 %v1145_v54  ;;  %v1142_v28 = vsel %vm504_vm13, %v1911_v5, 0.0  ;;  %1912 = vpow2.f32 %v1134_v61 }
 0xdc8   :  { %v1913_v6 = vpop.eup %1912 }
 0xdc9   :  { %v1148_v7 = vsel %vm504_vm13, %v1913_v6, 0.0 }
 0xdca   :  { %1164 = vrot.lane.b32.xlu2 %v2415_v10, %s1966_s4 }
 0xdd5   :  { %v1169_v60 = vpop.permute.xlu1 %1168 }
 0xdd6   :  { %v1182_v63 = vsel %vm580_vm14, %v1169_v60, 0 }
 0xdd7   :  { %1189 = vmatpush.bf16.msrb.mxu1 %v1182_v63  ;;  %v1849_v63 = vld [vmem:[%s2549_s10 + $0x10] sm:$0xff] }
 0xdd8   :  { %1311 = vmatpush.bf16.msrb.mxu0 %v1849_v63 }
 0xde8   :  { %1143 = vadd.xlane.f32.xlu0 %v1142_v28 }
 0xdf3   :  { %1149 = vadd.xlane.f32.xlu2 %v1148_v7 }
 0xe1d   :  { %v1138_v35 = vpop.xlane.xlu0 %1137 }
 0xe25   :  { %v1141_v9 = vpop.xlane.xlu2 %1140 }
 0xe26   :  { %1914 = vrcp.f32 %v1141_v9 }
 0xe27   :  { %1916 = vrcp.f32 %v1138_v35 }
 0xe2c   :  { %v1915_v10 = vpop.eup %1914 }
 0xe2d   :  { %v1917_v62 = vpop.eup %1916  ;;  %v1157_v43 = vmul.f32 %v1915_v10, %v1907_v19  ;;  %v1165_v47 = vpop.permute.xlu2 %1164 }
 0xe2e   :  { %v1156_v44 = vmul.f32 %v1917_v62, %v1905_v48 }
 0xe30   :  { %v1167_v37 = vpop.permute.xlu0 %1166  ;;  %v1161_v52 = vpack.c.bf16 %v1157_v43, %v1156_v44 }
 0xe31   :  { %1190 = vmatpush.bf16.msrb.mxu1 %v1167_v37 }
 0xe35   :  { %1191 = vmatpush.bf16.msrb.mxu1 %v1165_v47  ;;  %v1147_v11 = vpop.xlane.xlu1 %1146 }
 0xe36   :  { %1918 = vrcp.f32 %v1147_v11 }
 0xe38   :  { %1756 = vmatmul.msk.bf16.vlgmr.msrb.gmra.mxu1 %vm504_vm13, %v1161_v52  ;;  %v1276_v52 = vperm.slane %v2374_v16, 3 }
 0xe3c   :  { %v1919_v13 = vpop.eup %1918 }
 0xe3d   :  { %v1159_v21 = vmul.f32 %v1919_v13, %v1909_v25 }
 0xe5b   :  { %v1144_v12 = vpop.xlane.xlu0 %1143 }
 0xe5c   :  { %1920 = vrcp.f32 %v1144_v12 }
 0xe62   :  { %v1921_v15 = vpop.eup %1920 }
 0xe63   :  { %v1158_v4 = vmul.f32 %v1921_v15, %v1911_v5  ;;  %v1279_v15 = vperm.slane %v2374_v16, 4 }
 0xe65   :  { %v1162_v20 = vpack.c.bf16 %v1159_v21, %v1158_v4 }
 0xe66   :  { %v1150_v23 = vpop.xlane.xlu2 %1149 }
 0xe67   :  { %1757 = vmatmul.msk.bf16.gmra.mxu1 %vm504_vm13, %v1162_v20  ;;  %1922 = vrcp.f32 %v1150_v23 }
 0xe6d   :  { %v1923_v26 = vpop.eup %1922 }
 0xe6e   :  { %v1160_v27 = vmul.f32 %v1923_v26, %v1913_v6 }
 0xe70   :  { %v1163_v29 = vpack.c.bf16 %v1160_v27, %v1160_v27 }
 0xe77   :  { %1758 = vmatmul.msk.bf16.gmra.mxu1 %vm504_vm13, %v1163_v29  ;;  %v1288_v29 = vperm.slane %v2374_v16, 6 }
 0xeb5   :  { %v1193_v31 = vpop.f32.mrf.mxu1 }
 0xebd   :  { %v1195_v59 = vpop.f32.mrf.mxu1 }
 0xebe   :  { %v1207_v49 = vpack.c.bf16 %v1195_v59, %v1193_v31 }
 0xee4   :  { %v1198_v32 = vpop.f32.mrf.mxu1 }
 0xeec   :  { %v1200_v33 = vpop.f32.mrf.mxu1 }
 0xeed   :  { %v1208_v39 = vpack.c.bf16 %v1200_v33, %v1198_v32 }
 0xef4   :  { %v1203_v34 = vpop.f32.mrf.mxu1 }
 0xef5   :  { %v1209_v38 = vpack.c.bf16 %v1203_v34, %v1203_v34 }
 0xef7   :  { %v1211_v8 = vsel %vm580_vm14, %v1209_v38, 0 }
 0xef8   :  { %1218 = vmatpush.bf16.msrb.mxu2 %v1211_v8 }
 0xefc   :  { %v1205_v40 = vpop.f32.mrf.mxu1  ;;  %1219 = vmatpush.bf16.msrb.mxu2 %v1208_v39 }
 0xf00   :  { %1220 = vmatpush.bf16.msrb.mxu2 %v1207_v49 }
 0xf03   :  { %1759 = vmatmul.msk.bf16.vlgmr.msrb.gmra.mxu2 %vm504_vm13, %v2288_v51 }
 0xf86   :  { %v1222_v42 = vpop.f32.mrf.mxu2 }
 0xf87   :  { %v1227_v14 = vadd.f32 %v1222_v42, %v2354_v41 }
 0xf89   :  { %v2456_v58 = vadd.f32 %v1229_v3, %v1227_v14 }
 0xf8b   :  { %v1232_v1 = vsel %vm215_vm1, %v2456_v58, 0.0 }
 0xf8c   :  { %1233 = vadd.xlane.f32.xlu0 %v1232_v1 }
 0xf8e   :  { %v1224_v46 = vpop.f32.mrf.mxu2 }
 0xf8f   :  { %v1228_v48 = vadd.f32 %v1224_v46, %v2359_v45  ;;  %v1854_v46 = vld [vmem:[%s2550_s11 + $0x38] sm:$0xff] }
 0xf90   :  { %1439 = vmatpush.bf16.msra.mxu1 %v1854_v46 }
 0xf91   :  { %v2461_v18 = vadd.f32 %v1229_v3, %v1228_v48 }
 0xf93   :  { %v1235_v2 = vsel %vm219_vm2, %v2461_v18, 0.0 }
 0xf94   :  { %1236 = vadd.xlane.f32.xlu1 %v1235_v2 }
 0xfff   :  { %v1234_v51 = vpop.xlane.xlu0 %1233 }
0x1000   :  { %v1238_v19 = vmul.f32 %v1234_v51, %v2112_v36 }
0x1002   :  { %v1240_v41 = vsub.f32 %v2456_v58, %v1238_v19 }
0x1004   :  { %v1242_v24 = vmul.f32 %v1240_v41, %v1240_v41 }
0x1006   :  { %v1244_v56 = vsel %vm215_vm1, %v1242_v24, 0.0 }
0x1007   :  { %1245 = vadd.xlane.f32.xlu2 %v1244_v56  ;;  %v1237_v50 = vpop.xlane.xlu1 %1236 }
0x1008   :  { %v1239_v53 = vmul.f32 %v1237_v50, %v2112_v36 }
0x100a   :  { %v1241_v45 = vsub.f32 %v2461_v18, %v1239_v53 }
0x100c   :  { %v1243_v25 = vmul.f32 %v1241_v45, %v1241_v45 }
0x100e   :  { %v1247_v54 = vsel %vm219_vm2, %v1243_v25, 0.0 }
0x100f   :  { %1248 = vadd.xlane.f32.xlu0 %v1247_v54  ;;  %v1852_v54 = vld [vmem:[%s2550_s11 + $0x28] sm:$0xff] }
0x107a   :  { %v1246_v30 = vpop.xlane.xlu2 %1245 }
0x107b   :  { %v1250_v60 = vmul.f32 %v1246_v30, %v2112_v36 }
0x107d   :  { %v1252_v57 = vadd.f32 1e-05, %v1250_v60 }
0x107f   :  { %1924 = vrsqrt.f32 %v1252_v57  ;;  %vm1260_vm13 = vweird.f32 %v1252_v57 }
0x1082   :  { %v1249_v0 = vpop.xlane.xlu0 %1248 }
0x1083   :  { %v1251_v22 = vmul.f32 %v1249_v0, %v2112_v36 }
0x1085   :  { %v1925_v5 = vpop.eup %1924  ;;  %v1253_v61 = vadd.f32 1e-05, %v1251_v22 }
0x1086   :  { %v1255_v28 = vmul.f32 %v1925_v5, %v1252_v57  ;;  %vm1261_vm12 = vweird.f32 %v1925_v5 }
0x1087   :  { %1926 = vrsqrt.f32 %v1253_v61  ;;  %vm1262_vm14 = vmor %vm1260_vm13, %vm1261_vm12  ;;  %vm1270_vm9 = vweird.f32 %v1253_v61 }
0x1088   :  { %v1256_v6 = vmul.f32 %v1925_v5, %v1255_v28 }
0x108a   :  { %v1257_v7 = vmul.f32 0.5, %v1256_v6 }
0x108c   :  { %v1258_v9 = vsub.f32 1.5, %v1257_v7 }
0x108d   :  { %v1927_v35 = vpop.eup %1926 }
0x108e   :  { %v1259_v10 = vmul.f32 %v1925_v5, %v1258_v9  ;;  %v1265_v37 = vmul.f32 %v1927_v35, %v1253_v61  ;;  %vm1271_vm8 = vweird.f32 %v1927_v35 }
0x108f   :  { %vm1272_vm15 = vmor %vm1270_vm9, %vm1271_vm8 }
0x1090   :  { %v1266_v62 = vmul.f32 %v1927_v35, %v1265_v37  ;;  %v1263_v43 = vsel %vm1262_vm14, %v1925_v5, %v1259_v10  ;;  %v1851_v5 = vld [vmem:[%s2550_s11 + $0x20] sm:$0xff] }
0x1091   :  { %v1274_v11 = vmul.f32 %v1263_v43, %v1240_v41  ;;  %v1853_v41 = vld [vmem:[%s2550_s11 + $0x30] sm:$0xff] }
0x1092   :  { %v1267_v44 = vmul.f32 0.5, %v1266_v62  ;;  %1440 = vmatpush.bf16.msra.mxu1 %v1853_v41 }
0x1093   :  { %v1277_v4 = vmul.f32 %v1276_v52, %v1274_v11 }
0x1094   :  { %v1268_v47 = vsub.f32 1.5, %v1267_v44 }
0x1095   :  { %v1280_v23 = vadd.f32 %v1279_v15, %v1277_v4 }
0x1096   :  { %v1269_v12 = vmul.f32 %v1927_v35, %v1268_v47  ;;  %1441 = vmatpush.bf16.msra.mxu1 %v1852_v54 }
0x1098   :  { %v1273_v13 = vsel %vm1272_vm15, %v1927_v35, %v1269_v12 }
0x1099   :  { %v1275_v21 = vmul.f32 %v1273_v13, %v1241_v45 }
0x109a   :  { %1442 = vmatpush.bf16.msra.mxu1 %v1851_v5 }
0x109b   :  { %v1278_v20 = vmul.f32 %v1276_v52, %v1275_v21 }
0x109d   :  { %v1281_v26 = vadd.f32 %v1279_v15, %v1278_v20 }
0x109f   :  { %v1282_v27 = vpack.c.bf16 %v1281_v26, %v1280_v23 }
0x10a1   :  { %1772 = vmatmul.msk.bf16.vlgmr.msrb.gmra.mxu0 %vm215_vm1, %v1282_v27 }
0x111e   :  { %v1313_v31 = vpop.f32.mrf.mxu0 }
0x111f   :  { %v2483_v59 = vadd.f32 %v1313_v31, %v1288_v29 }
0x1121   :  { %v2486_v32 = vmul.f32 0.70710677, %v2483_v59 }
0x1123   :  { %v1326_v33 = vand.u32 2147483647, %v2486_v32  ;;  %vm1322_vm8 = vcmp.ge.f32.partialorder %v2486_v32, 0.0 }
0x1125   :  { %v1328_v34 = vmul.f32 0.3275911, %v1326_v33  ;;  %v1380_v30 = vsub.f32 0.0, %v1326_v33 }
0x1126   :  { %v1315_v38 = vpop.f32.mrf.mxu0 }
0x1127   :  { %v1330_v8 = vadd.f32 1.0, %v1328_v34  ;;  %v2489_v39 = vadd.f32 %v1315_v38, %v1288_v29  ;;  %v1382_v28 = vmul.f32 %v1380_v30, %v1326_v33 }
0x1129   :  { %1928 = vrcp.f32 %v1330_v8  ;;  %v2492_v40 = vmul.f32 0.70710677, %v2489_v39  ;;  %v1343_v2 = vand.u32 2147483648, %v1330_v8  ;;  %v1341_v19 = vand.u32 2147483647, %v1330_v8 }
0x112a   :  { %vm1337_vm4 = vweird.f32 %v1330_v8  ;;  %v1384_v37 = vmul.f32 1.442695, %v1382_v28 }
0x112b   :  { %v1327_v49 = vand.u32 2147483647, %v2492_v40  ;;  %v1344_v56 = vor.u32 1.1754944e-38, %v1343_v2  ;;  %vm1342_vm6 = vcmp.eq.f32.partialorder %v1341_v19, 8.507059e+37  ;;  %vm1323_vm9 = vcmp.ge.f32.partialorder %v2492_v40, 0.0 }
0x112c   :  { %v1318_v2 = vmul.f32 0.5, %v2483_v59  ;;  %v1451_v40 = vperm.slane %v2374_v16, 5 }
0x112d   :  { %v1329_v3 = vmul.f32 0.3275911, %v1327_v49  ;;  %v1381_v43 = vsub.f32 0.0, %v1327_v49 }
0x112f   :  { %v1929_v42 = vpop.eup %1928  ;;  %v1331_v1 = vadd.f32 1.0, %v1329_v3  ;;  %v1383_v12 = vmul.f32 %v1381_v43, %v1327_v49  ;;  %v1324_v3 = vsel %vm1322_vm8, 1.0, %v1967_v17 }
0x1130   :  { %v1333_v14 = vmul.f32 %v1929_v42, %v1330_v8  ;;  %vm1338_vm3 = vweird.f32 %v1929_v42 }
0x1131   :  { %1930 = vrcp.f32 %v1331_v1  ;;  %vm1339_vm5 = vmor %vm1337_vm4, %vm1338_vm3  ;;  %v1358_v63 = vand.u32 2147483648, %v1331_v1  ;;  %v1356_v22 = vand.u32 2147483647, %v1331_v1  ;;  %vm1352_vm12 = vweird.f32 %v1331_v1 }
0x1132   :  { %v1334_v48 = vsub.f32 1.0, %v1333_v14  ;;  %1932 = vpow2.f32 %v1384_v37  ;;  %v1386_v20 = vmul.f32 1.442695, %v1383_v12 }
0x1133   :  { %v1359_v9 = vor.u32 1.1754944e-38, %v1358_v63  ;;  %vm1357_vm14 = vcmp.eq.f32.partialorder %v1356_v22, 8.507059e+37  ;;  %v1855_v22 = vld [vmem:[%s2552_s13] sm:$0xff] }
0x1134   :  { %v1335_v51 = vmul.f32 %v1929_v42, %v1334_v48  ;;  %1934 = vpow2.f32 %v1386_v20 }
0x1136   :  { %v1336_v24 = vadd.f32 %v1929_v42, %v1335_v51  ;;  %v1319_v51 = vmul.f32 0.5, %v2489_v39  ;;  %v1454_v39 = vld [vmem:[%s2546_s7] sm:$0x1] }
0x1137   :  { %v1931_v50 = vpop.eup %1930 }
0x1138   :  { %v1340_v53 = vsel %vm1339_vm5, %v1929_v42, %v1336_v24  ;;  %v1348_v25 = vmul.f32 %v1931_v50, %v1331_v1  ;;  %vm1353_vm7 = vweird.f32 %v1931_v50  ;;  %v1933_v26 = vpop.eup %1932  ;;  %v1325_v1 = vsel %vm1323_vm9, 1.0, %v1967_v17 }
0x1139   :  { %v1345_v45 = vsel %vm1342_vm6, %v1344_v56, %v1340_v53  ;;  %vm1354_vm13 = vmor %vm1352_vm12, %vm1353_vm7 }
0x113a   :  { %v1362_v55 = vmul.f32 1.0614054, %v1345_v45  ;;  %v1349_v60 = vsub.f32 1.0, %v1348_v25  ;;  %v1935_v8 = vpop.eup %1934 }
0x113c   :  { %v1364_v57 = vadd.f32 -1.4531521, %v1362_v55  ;;  %v1350_v0 = vmul.f32 %v1931_v50, %v1349_v60 }
0x113e   :  { %v1366_v61 = vmul.f32 %v1364_v57, %v1345_v45  ;;  %v1351_v6 = vadd.f32 %v1931_v50, %v1350_v0  ;;  %v1856_v0 = vld [vmem:[%s2552_s13 + $0x8] sm:$0xff]  ;;  %s1968_s13 = smov [#allocation2]  }
0x113f   :  { %1529 = vmatpush.bf16.msrb.mxu3 %v1856_v0  ;;  %s1543_s6 = sshll.u32 %s1968_s13, 4  ;;  %s1544_s6 = int_to_ptr.vmem [resolvable:$true] %s1543_s6 }
0x1140   :  { %v1368_v7 = vadd.f32 1.4214138, %v1366_v61  ;;  %v1355_v35 = vsel %vm1354_vm13, %v1931_v50, %v1351_v6 }
0x1141   :  { %v1360_v62 = vsel %vm1357_vm14, %v1359_v9, %v1355_v35 }
0x1142   :  { %v1370_v10 = vmul.f32 %v1368_v7, %v1345_v45  ;;  %v1363_v44 = vmul.f32 1.0614054, %v1360_v62 }
0x1143   :  { %1530 = vmatpush.bf16.msrb.mxu3 %v1855_v22 }
0x1144   :  { %v1372_v47 = vadd.f32 -0.28449672, %v1370_v10  ;;  %v1365_v52 = vadd.f32 -1.4531521, %v1363_v44  ;;  %v1475_v10 = vld [vmem:[%s2553_s14] sm:$0xff]  ;;  %s1545_s14 = sshll.u32 %s2554_s15, 4  ;;  %s1546_s14 = int_to_ptr.hbm [resolvable:$true] %s1545_s14 }
0x1145   :  { %v1498_v43 = vperm.slane %v1475_v10, 0 }
0x1146   :  { %v1374_v11 = vmul.f32 %v1372_v47, %v1345_v45  ;;  %v1367_v13 = vmul.f32 %v1365_v52, %v1360_v62  ;;  %v1500_v52 = vperm.slane %v1475_v10, 1 }
0x1148   :  { %v1376_v15 = vadd.f32 0.2548296, %v1374_v11  ;;  %v1369_v4 = vadd.f32 1.4214138, %v1367_v13  ;;  %v1507_v13 = vperm.slane %v1475_v10, 2 }
0x114a   :  { %v1378_v21 = vmul.f32 %v1376_v15, %v1345_v45  ;;  %v1371_v23 = vmul.f32 %v1369_v4, %v1360_v62 }
0x114c   :  { %v1388_v27 = vmul.f32 %v1933_v26, %v1378_v21  ;;  %v1373_v29 = vadd.f32 -0.28449672, %v1371_v23 }
0x114e   :  { %v1375_v31 = vmul.f32 %v1373_v29, %v1360_v62  ;;  %v1390_v33 = vsub.f32 1.0, %v1388_v27 }
0x1150   :  { %v1377_v34 = vadd.f32 0.2548296, %v1375_v31  ;;  %v1392_v49 = vmul.f32 %v1390_v33, %v1324_v3 }
0x1152   :  { %v1379_v38 = vmul.f32 %v1377_v34, %v1360_v62  ;;  %v1394_v46 = vadd.f32 1.0, %v1392_v49 }
0x1154   :  { %v1389_v42 = vmul.f32 %v1935_v8, %v1379_v38  ;;  %v1396_v19 = vmul.f32 %v1394_v46, %v1318_v2 }
0x1156   :  { %v1391_v14 = vsub.f32 1.0, %v1389_v42 }
0x1158   :  { %v1393_v48 = vmul.f32 %v1391_v14, %v1325_v1 }
0x115a   :  { %v1395_v32 = vadd.f32 1.0, %v1393_v48 }
0x115c   :  { %v1397_v41 = vmul.f32 %v1395_v32, %v1319_v51 }
0x115e   :  { %v1398_v24 = vpack.c.bf16 %v1397_v41, %v1396_v19 }
0x1160   :  { %1797 = vmatmul.msk.bf16.vlgmr.msra.gmra.mxu1 %vm161_vm0, %v1398_v24 }
0x11dd   :  { %v1444_v56 = vpop.f32.mrf.mxu1 }
0x11de   :  { %v1449_v50 = vadd.f32 %v1444_v56, %v2456_v58 }
0x11e0   :  { %v1452_v45 = vadd.f32 %v1451_v40, %v1449_v50 }
0x11e5   :  { %v1446_v53 = vpop.f32.mrf.mxu1 }
0x11e6   :  { %v1450_v17 = vadd.f32 %v1446_v53, %v2461_v18 }
0x11e8   :  { %v1453_v25 = vadd.f32 %v1451_v40, %v1450_v17 }
0x11ea   :  { %v1455_v54 = vpack.c.bf16 %v1453_v25, %v1452_v45 }
0x11ec   :  { %v1460_v59 = vsel %vm328_vm10, %v1455_v54, 0 }
0x11ed   :  { %1469 = vmatpush.bf16.msra.mxu2 %v1460_v59 }
0x11f0   :  { %1798 = vmatmul.msk.bf16.vlgmr.msra.gmra.mxu2 %vm318_vm11, %v1454_v39  ;;  %vm1536_vm11 = vcmask 74752  }
0x1273   :  { %v1471_v55 = vpop.f32.mrf.mxu2 }
0x1274   :  { %v1476_v58 = vsel %vm219_vm2, %v1471_v55, 0.0 }
0x1275   :  { %1477 = vadd.xlane.f32.xlu1 %v1476_v58 }
0x127b   :  { %v1473_v16 = vpop.f32.mrf.mxu2 }
0x12e8   :  { %v1478_v30 = vpop.xlane.xlu1 %1477 }
0x12e9   :  { %v1479_v18 = vmul.f32 %v1478_v30, %v2112_v36 }
0x12eb   :  { %v1480_v60 = vsub.f32 %v1471_v55, %v1479_v18 }
0x12ed   :  { %v1481_v57 = vmul.f32 %v1480_v60, %v1480_v60 }
0x12ef   :  { %v1482_v63 = vsel %vm219_vm2, %v1481_v57, 0.0 }
0x12f0   :  { %1483 = vadd.xlane.f32.xlu2 %v1482_v63 }
0x1363   :  { %v1484_v5 = vpop.xlane.xlu2 %1483 }
0x1364   :  { %v1485_v61 = vmul.f32 %v1484_v5, %v2112_v36 }
0x1366   :  { %v1486_v28 = vadd.f32 1e-05, %v1485_v61 }
0x1368   :  { %1936 = vrsqrt.f32 %v1486_v28  ;;  %vm1493_vm2 = vweird.f32 %v1486_v28 }
0x136e   :  { %v1937_v6 = vpop.eup %1936 }
0x136f   :  { %v1488_v7 = vmul.f32 %v1937_v6, %v1486_v28  ;;  %vm1494_vm0 = vweird.f32 %v1937_v6 }
0x1370   :  { %vm1495_vm10 = vmor %vm1493_vm2, %vm1494_vm0 }
0x1371   :  { %v1489_v9 = vmul.f32 %v1937_v6, %v1488_v7 }
0x1373   :  { %v1490_v35 = vmul.f32 0.5, %v1489_v9 }
0x1375   :  { %v1491_v37 = vsub.f32 1.5, %v1490_v35 }
0x1377   :  { %v1492_v62 = vmul.f32 %v1937_v6, %v1491_v37 }
0x1379   :  { %v1496_v44 = vsel %vm1495_vm10, %v1937_v6, %v1492_v62 }
0x137a   :  { %v1497_v47 = vmul.f32 %v1496_v44, %v1480_v60 }
0x137c   :  { %v1499_v36 = vmul.f32 %v1498_v43, %v1497_v47 }
0x137e   :  { %v1501_v11 = vadd.f32 %v1500_v52, %v1499_v36 }
0x1380   :  { %v1502_v12 = vpack.c.bf16 %v1501_v11, %v1501_v11 }
0x1382   :  { %1807 = vmatmul.msk.bf16.vlgmr.msrb.gmra.mxu3 %vm215_vm1, %v1502_v12 }
0x1405   :  { %v1532_v15 = vpop.f32.mrf.mxu3 }
0x1406   :  { %v1533_v4 = vadd.f32 %v1532_v15, %v1507_v13 }
0x1408   :  { %1537 = vst.msk [vmem:[#allocation2] sm:$0x3] %vm1536_vm11, %v1533_v4 }
0x1409   :  { %1548 = dma.vmem_to_hbm [thread:$0]  %s1544_s6, 32, %s1546_s14, [#allocation3]  }
0x140d   :  { %v1534_v21 = vpop.f32.mrf.mxu3 }
0x140e   :  { %1962 = dma.done.wait [#allocation3], 32  }
0x140f   :  { %1963 = vsyncadd [#allocation3], 4294967264 }
0x1410   :  { %1553 = vsyncpa [#allocation3], 1 }

</bundles_post_ra>
